<compile_context>
chip_gen: v7x
topology: tpu7x:2x2x1
jax: 0.10.0
libtpu: 0.0.40
codegen_flags: <defaults>
</compile_context>

<pallas_src>
import functools

import jax
import jax.numpy as jnp
from jax.experimental import pallas as pl
from jax.experimental.pallas import tpu as pltpu

# -------------------- tiny synthetic RoBERTa config --------------------
CFG = dict(
    vocab=128,
    hidden=32,
    layers=2,
    heads=4,
    inter=64,
    max_pos=40,
    pad=1,           # RoBERTa padding_idx
    type_vocab=1,
    num_classes=3,
    eps=1e-5,
)
LORA_R = 4
LORA_ALPHA = 8
LORA_SCALE = LORA_ALPHA / LORA_R
CLS_PAD = 128        # lane-dense width for classifier logits (sliced to num_classes)
NEG_MASK = -1e9      # finite additive attention mask (no exp(-inf) NaN hazard)
GELU_C = 0.7978845608028654   # sqrt(2/pi)


# -------------------- embeddings-sum + LayerNorm (fused) --------------------
def _emb_layernorm_kernel(eps, tok_ref, pos_ref, typ_ref, g_ref, b_ref, o_ref):
    x = tok_ref[...] + pos_ref[...] + typ_ref[...]          # f32
    mu = jnp.mean(x, axis=-1, keepdims=True)
    var = jnp.mean(jnp.square(x - mu), axis=-1, keepdims=True)
    y = (x - mu) * jax.lax.rsqrt(var + eps)
    o_ref[...] = (y * g_ref[...] + b_ref[...]).astype(o_ref.dtype)


def emb_layernorm(tok, pos, typ, gamma, beta, eps=CFG["eps"]):
    M, H = tok.shape
    return pl.pallas_call(
        functools.partial(_emb_layernorm_kernel, eps),
        out_shape=jax.ShapeDtypeStruct((M, H), jnp.bfloat16),   # bf16 hidden state out
        grid=(1,),
        in_specs=[pl.BlockSpec((M, H), lambda i: (0, 0)),
                  pl.BlockSpec((M, H), lambda i: (0, 0)),
                  pl.BlockSpec((1, H), lambda i: (0, 0)),
                  pl.BlockSpec((1, H), lambda i: (0, 0)),
                  pl.BlockSpec((1, H), lambda i: (0, 0))],
        out_specs=pl.BlockSpec((M, H), lambda i: (0, 0)),
    )(tok, pos, typ, gamma, beta)


# -------------------- whole encoder stack in ONE pallas_call --------------------
def _encoder_stack_kernel(eps, scale, nh, dh,
                          x_ref, mask_ref,
                          wqkv_ref, bqkv_ref, wo_ref, bo_ref,
                          ln1g_ref, ln1b_ref, wi_ref, bi_ref,
                          wo2_ref, bo2_ref, ln2g_ref, ln2b_ref,
                          hs_ref,
                          xc_ref, ctx_ref):
    """Grid = (batch, layer). Residual stream carried in f32 VMEM scratch across layers."""
    f32, bf16 = jnp.float32, jnp.bfloat16
    l = pl.program_id(1)

    @pl.when(l == 0)            # first layer step of this batch row: load embeddings
    def _():
        xc_ref[...] = x_ref[0].astype(f32)

    x = xc_ref[...]             # (S, H) f32 residual stream
    S, H = x.shape

    def layer_norm(v, g, b):    # LN math stays f32 (v5e-safe)
        mu = jnp.mean(v, axis=-1, keepdims=True)
        var = jnp.mean(jnp.square(v - mu), axis=-1, keepdims=True)
        return (v - mu) * jax.lax.rsqrt(var + eps) * g + b

    # --- fused Q|K|V projection (LoRA folded into the weight); cast to bf16 ONCE ---
    qkv = jnp.dot(x.astype(bf16), wqkv_ref[0], preferred_element_type=f32) + bqkv_ref[0]
    qkv_b = qkv.astype(bf16)                                  # per-head slices are bf16

    # additive mask broadcast hoisted out of the head loop (JAX does not CSE broadcasts)
    mask_full = jnp.broadcast_to(mask_ref[0], (S, S))         # (1, S) -> (S, S)

    # --- per-head attention; ctx written into a bf16 VMEM slab so the output
    #     projection is ONE full-K (H) MXU matmul after the loop ---
    # TODO(synk): at 16 heads switch to lax.fori_loop(unroll=4) to bound live ranges.
    for h in range(nh):
        lo = h * dh
        qh = qkv_b[:, lo:lo + dh]
        kh = qkv_b[:, H + lo:H + lo + dh]
        vh = qkv_b[:, 2 * H + lo:2 * H + lo + dh]
        # contract last dims of both operands -> no materialized K transpose
        s = jax.lax.dot_general(qh, kh, (((1,), (1,)), ((), ())),
                                preferred_element_type=f32) * scale
        s = s + mask_full
        s = s - jnp.max(s, axis=-1, keepdims=True)
        p = jnp.exp(s)
        p = p * pl.reciprocal(jnp.sum(p, axis=-1, keepdims=True), approx=True)
        ctx_ref[:, lo:lo + dh] = jnp.dot(p.astype(bf16), vh,
                                         preferred_element_type=f32).astype(bf16)

    # single full-K output projection over the merged-heads slab
    attn = jnp.dot(ctx_ref[...], wo_ref[0], preferred_element_type=f32) + bo_ref[0]
    x1 = layer_norm(attn + x, ln1g_ref[0], ln1b_ref[0])

    # --- FFN (tanh-approx GELU: runs on the EUP slot, not VALU) ---
    inter = jnp.dot(x1.astype(bf16), wi_ref[0], preferred_element_type=f32) + bi_ref[0]
    inter = 0.5 * inter * (1.0 + jnp.tanh(GELU_C * (inter + 0.044715 * inter * inter * inter)))
    ffn = jnp.dot(inter.astype(bf16), wo2_ref[0], preferred_element_type=f32) + bo2_ref[0]
    x2 = layer_norm(ffn + x1, ln2g_ref[0], ln2b_ref[0])

    xc_ref[...] = x2                        # carry f32 residual stream to next layer step
    hs_ref[0, 0] = x2.astype(hs_ref.dtype)  # bf16 per-layer hidden state to HBM


def encoder_stack(x, add_mask, prep):
    """x: (B, S, H) bf16 embeddings, add_mask: (B, 1, S) f32 additive.
    Returns (L, B, S, H) bf16 per-layer hidden states, computed in one pallas_call."""
    B, S, H = x.shape
    L = prep["wqkv"].shape[0]
    NH = CFG["heads"]
    Dh = H // NH
    I = prep["wi"].shape[2]
    scale = 1.0 / float(Dh) ** 0.5

    def wspec(arr):   # per-layer weight block, indexed by the layer grid axis (prefetched)
        return pl.BlockSpec((1,) + arr.shape[1:],
                            lambda b, l: (l,) + (0,) * (arr.ndim - 1))

    weight_args = (prep["wqkv"], prep["bqkv"], prep["wo"], prep["bo"],
                   prep["ln1_g"], prep["ln1_b"], prep["wi"], prep["bi"],
                   prep["wo2"], prep["bo2"], prep["ln2_g"], prep["ln2_b"])

    flops = int(B * L * (2 * S * H * (3 * H + H + 2 * I) + 4 * NH * S * S * Dh))
    transc = int(B * L * (NH * S * S + S * I))
    bytes_acc = int(x.size * x.dtype.itemsize
                    + B * L * S * H * 2                     # bf16 hidden-state writes
                    + add_mask.size * 4
                    + B * sum(int(a.size) * a.dtype.itemsize for a in weight_args))

    return pl.pallas_call(
        functools.partial(_encoder_stack_kernel, CFG["eps"], scale, NH, Dh),
        out_shape=jax.ShapeDtypeStruct((L, B, S, H), jnp.bfloat16),
        grid=(B, L),
        in_specs=[pl.BlockSpec((1, S, H), lambda b, l: (b, 0, 0)),   # resident across l
                  pl.BlockSpec((1, 1, S), lambda b, l: (b, 0, 0))]
                 + [wspec(a) for a in weight_args],
        out_specs=pl.BlockSpec((1, 1, S, H), lambda b, l: (l, b, 0, 0)),
        scratch_shapes=[pltpu.VMEM((S, H), jnp.float32),    # carried residual stream
                        pltpu.VMEM((S, H), jnp.bfloat16)],  # merged-heads ctx slab
        compiler_params=pltpu.CompilerParams(
            dimension_semantics=("parallel", "arbitrary"),
            # explicit scoped-VMEM budget; at production sizes tune per chip
            # (~100 MiB v5e/v6e, ~56 MiB v7x) — toy footprint is < 1 MiB.
            vmem_limit_bytes=50 * 1024 * 1024),
        cost_estimate=pl.CostEstimate(flops=flops, transcendentals=transc,
                                      bytes_accessed=bytes_acc),
    )(x, add_mask, *weight_args)


# -------------------- fused classification head (dense + tanh + out_proj) --------------------
def _cls_head_kernel(x_ref, w1_ref, b1_ref, w2_ref, b2_ref, o_ref):
    f32, bf16 = jnp.float32, jnp.bfloat16
    h = jnp.dot(x_ref[...], w1_ref[...], preferred_element_type=f32) + b1_ref[...]
    h = jnp.tanh(h)
    y = jnp.dot(h.astype(bf16), w2_ref[...], preferred_element_type=f32) + b2_ref[...]
    o_ref[...] = y.astype(o_ref.dtype)      # lane-dense (B, 128) slab; sliced in wrapper


def cls_head(x, w1, b1, w2, b2):
    B, H = x.shape
    P = w2.shape[1]
    return pl.pallas_call(
        _cls_head_kernel,
        out_shape=jax.ShapeDtypeStruct((B, P), jnp.float32),
        grid=(1,),
        in_specs=[pl.BlockSpec((B, H), lambda i: (0, 0)),
                  pl.BlockSpec((H, H), lambda i: (0, 0)),
                  pl.BlockSpec((1, H), lambda i: (0, 0)),
                  pl.BlockSpec((H, P), lambda i: (0, 0)),
                  pl.BlockSpec((1, P), lambda i: (0, 0))],
        out_specs=pl.BlockSpec((B, P), lambda i: (0, 0)),
    )(x, w1, b1, w2, b2)


# -------------------- deterministic parameter init (raw, f32) --------------------
def init_params(key):
    H, I, V, P = CFG["hidden"], CFG["inter"], CFG["vocab"], CFG["max_pos"]
    C = CFG["num_classes"]

    def nrm(k, shape, s=0.02):
        return (s * jax.random.normal(k, shape)).astype(jnp.float32)

    keys = jax.random.split(key, 8 + CFG["layers"])
    params = {
        "word_emb": nrm(keys[0], (V, H)),
        "pos_emb": nrm(keys[1], (P, H)),
        "type_emb": nrm(keys[2], (CFG["type_vocab"], H)),
        "emb_ln_g": jnp.ones((H,), jnp.float32),
        "emb_ln_b": jnp.zeros((H,), jnp.float32),
        "cls_dense_w": nrm(keys[3], (H, H)),
        "cls_dense_b": jnp.zeros((H,), jnp.float32),
        "cls_out_w": nrm(keys[4], (H, C)),
        "cls_out_b": jnp.zeros((C,), jnp.float32),
        "layers": [],
    }
    for li in range(CFG["layers"]):
        lk = jax.random.split(keys[8 + li], 12)
        params["layers"].append({
            "Wq": nrm(lk[0], (H, H)), "bq": jnp.zeros((H,), jnp.float32),
            "Wk": nrm(lk[1], (H, H)), "bk": jnp.zeros((H,), jnp.float32),
            "Wv": nrm(lk[2], (H, H)), "bv": jnp.zeros((H,), jnp.float32),
            "Wo": nrm(lk[3], (H, H)), "bo": jnp.zeros((H,), jnp.float32),
            # LoRA adapters on query / value
            "Aq": nrm(lk[4], (H, LORA_R)), "Bq": nrm(lk[5], (LORA_R, H)),
            "Av": nrm(lk[6], (H, LORA_R)), "Bv": nrm(lk[7], (LORA_R, H)),
            "ln1_g": jnp.ones((H,), jnp.float32), "ln1_b": jnp.zeros((H,), jnp.float32),
            "Wi": nrm(lk[8], (H, I)), "bi": jnp.zeros((I,), jnp.float32),
            "Wo2": nrm(lk[9], (I, H)), "bo2": jnp.zeros((H,), jnp.float32),
            "ln2_g": jnp.ones((H,), jnp.float32), "ln2_b": jnp.zeros((H,), jnp.float32),
        })
    return params


# -------------------- one-time eval prep: fold LoRA, fuse QKV, stack layers, cast bf16 --------------------
def prepare_inference_params(params):
    H, I, C = CFG["hidden"], CFG["inter"], CFG["num_classes"]
    bf16 = jnp.bfloat16
    lps = params["layers"]

    def qkv_eff(lp):   # fold LoRA (eval-time identical): W_eff = W + (alpha/r) * A @ B
        wq = lp["Wq"] + LORA_SCALE * (lp["Aq"] @ lp["Bq"])
        wv = lp["Wv"] + LORA_SCALE * (lp["Av"] @ lp["Bv"])
        return jnp.concatenate([wq, lp["Wk"], wv], axis=1)          # (H, 3H)

    prep = {
        "word_emb": params["word_emb"],
        "pos_emb": params["pos_emb"],
        "type_emb": params["type_emb"].reshape(1, H),
        "emb_ln_g": params["emb_ln_g"].reshape(1, H),
        "emb_ln_b": params["emb_ln_b"].reshape(1, H),
        "cls_dense_w": params["cls_dense_w"].astype(bf16),
        "cls_dense_b": params["cls_dense_b"].reshape(1, H),
        # pad 3-class output projection to a lane-dense 128-wide slab
        "cls_out_w": jnp.zeros((H, CLS_PAD), jnp.float32)
                        .at[:, :C].set(params["cls_out_w"]).astype(bf16),
        "cls_out_b": jnp.zeros((1, CLS_PAD), jnp.float32)
                        .at[0, :C].set(params["cls_out_b"]),
        # per-layer weights stacked along the layer grid axis
        "wqkv": jnp.stack([qkv_eff(lp) for lp in lps]).astype(bf16),            # (L,H,3H)
        "bqkv": jnp.stack([jnp.concatenate([lp["bq"], lp["bk"], lp["bv"]])
                           .reshape(1, 3 * H) for lp in lps]),                  # (L,1,3H)
        "wo": jnp.stack([lp["Wo"] for lp in lps]).astype(bf16),                 # (L,H,H)
        "bo": jnp.stack([lp["bo"].reshape(1, H) for lp in lps]),
        "ln1_g": jnp.stack([lp["ln1_g"].reshape(1, H) for lp in lps]),
        "ln1_b": jnp.stack([lp["ln1_b"].reshape(1, H) for lp in lps]),
        "wi": jnp.stack([lp["Wi"] for lp in lps]).astype(bf16),                 # (L,H,I)
        "bi": jnp.stack([lp["bi"].reshape(1, I) for lp in lps]),
        "wo2": jnp.stack([lp["Wo2"] for lp in lps]).astype(bf16),               # (L,I,H)
        "bo2": jnp.stack([lp["bo2"].reshape(1, H) for lp in lps]),
        "ln2_g": jnp.stack([lp["ln2_g"].reshape(1, H) for lp in lps]),
        "ln2_b": jnp.stack([lp["ln2_b"].reshape(1, H) for lp in lps]),
    }
    return prep


# -------------------- RoBERTaNet forward (glue in JAX, hot path in fused Pallas kernels) --------------------
def roberta_forward(prep, input_ids, attention_mask):
    B, S = input_ids.shape
    H = CFG["hidden"]

    # --- embeddings (gathers are glue; sum + LayerNorm fused in one Pallas kernel) ---
    mask_int = (input_ids != CFG["pad"]).astype(jnp.int32)
    position_ids = jnp.cumsum(mask_int, axis=1) * mask_int + CFG["pad"]   # RoBERTa position ids
    position_ids = jnp.minimum(position_ids, CFG["max_pos"] - 1)          # guard OOB gather
    tok_emb = jnp.take(prep["word_emb"], input_ids, axis=0).reshape(B * S, H)
    pos_emb = jnp.take(prep["pos_emb"], position_ids, axis=0).reshape(B * S, H)

    x = emb_layernorm(tok_emb, pos_emb, prep["type_emb"],
                      prep["emb_ln_g"], prep["emb_ln_b"]).reshape(B, S, H)   # bf16

    add_mask = ((1.0 - attention_mask.astype(jnp.float32)) * NEG_MASK).reshape(B, 1, S)

    # whole encoder stack: ONE pallas_call over grid=(batch, layer)
    hs = encoder_stack(x, add_mask, prep)                    # (L, B, S, H) bf16

    # output_hidden_states=True in the reference model -> embeddings + per-layer outputs
    hidden_states = (x,) + tuple(hs[l] for l in range(hs.shape[0]))

    # --- RobertaClassificationHead: <s> token -> dense+tanh -> out_proj (fused, lane-padded) ---
    cls_tok = hs[-1][:, 0, :]                                # (B, H) bf16
    logits_pad = cls_head(cls_tok, prep["cls_dense_w"], prep["cls_dense_b"],
                          prep["cls_out_w"], prep["cls_out_b"])
    logits = logits_pad[:, :CFG["num_classes"]]              # slice off lane padding

    return {"logits": logits, "hidden_states": hidden_states}


# TODO(synk): tokenizer + pretrained-checkpoint loading have no Pallas equivalent; weights are synthetic.

if __name__ == "__main__":
    key = jax.random.PRNGKey(0)
    pkey, ikey = jax.random.split(key)
    params = init_params(pkey)
    prep = prepare_inference_params(params)         # LoRA fold / QKV concat / stack / bf16: once

    B, S = 2, 8
    input_ids = jax.random.randint(ikey, (B, S), 2, CFG["vocab"], dtype=jnp.int32)
    attention_mask = jnp.ones((B, S), jnp.int32).at[1, 6:].set(0)   # pad tail of 2nd sample
    input_ids = jnp.where(attention_mask == 1, input_ids, CFG["pad"])

    forward = jax.jit(roberta_forward)
    out = forward(prep, input_ids, attention_mask)
    jax.block_until_ready(out["logits"])
    jax.block_until_ready(out["hidden_states"][-1])

    assert out["logits"].shape == (B, CFG["num_classes"])
    assert len(out["hidden_states"]) == CFG["layers"] + 1
    assert bool(jnp.all(jnp.isfinite(out["logits"])))
    assert bool(jnp.all(jnp.isfinite(out["hidden_states"][-1].astype(jnp.float32))))
    print("KERNEL_OK")
</pallas_src>

<mosaic_0001>
module attributes {stable_mosaic.version = 11 : i64} {
  func.func @_emb_layernorm_kernel(%arg0: i32, %arg1: memref<16x32xf32, #tpu.memory_space<vmem>>, %arg2: memref<16x32xf32, #tpu.memory_space<vmem>>, %arg3: memref<1x32xf32, #tpu.memory_space<vmem>>, %arg4: memref<1x32xf32, #tpu.memory_space<vmem>>, %arg5: memref<1x32xf32, #tpu.memory_space<vmem>>, %arg6: memref<16x32xbf16, #tpu.memory_space<vmem>>) attributes {dimension_semantics = [#tpu.dimension_semantics<arbitrary>], iteration_bounds = array<i64: 1>, scalar_prefetch = 0 : i64, scratch_operands = 0 : i64, tpu.core_type = #tpu.core_type<tc>, window_params = [{pipeline_mode = #tpu.pipeline_mode<synchronous>, transform_indices = @transform_0, window_bounds = array<i64: 16, 32>}, {pipeline_mode = #tpu.pipeline_mode<synchronous>, transform_indices = @transform_1, window_bounds = array<i64: 16, 32>}, {pipeline_mode = #tpu.pipeline_mode<synchronous>, transform_indices = @transform_2, window_bounds = array<i64: 1, 32>}, {pipeline_mode = #tpu.pipeline_mode<synchronous>, transform_indices = @transform_3, window_bounds = array<i64: 1, 32>}, {pipeline_mode = #tpu.pipeline_mode<synchronous>, transform_indices = @transform_4, window_bounds = array<i64: 1, 32>}, {pipeline_mode = #tpu.pipeline_mode<synchronous>, transform_indices = @transform_5, window_bounds = array<i64: 16, 32>}]} {
    %c0 = arith.constant 0 : index
    %c0_0 = arith.constant 0 : index
    %0 = vector.load %arg1[%c0, %c0_0] : memref<16x32xf32, #tpu.memory_space<vmem>>, vector<16x32xf32>
    %c0_1 = arith.constant 0 : index
    %c0_2 = arith.constant 0 : index
    %1 = vector.load %arg2[%c0_1, %c0_2] : memref<16x32xf32, #tpu.memory_space<vmem>>, vector<16x32xf32>
    %2 = arith.addf %0, %1 : vector<16x32xf32>
    %c0_3 = arith.constant 0 : index
    %c0_4 = arith.constant 0 : index
    %3 = vector.load %arg3[%c0_3, %c0_4] : memref<1x32xf32, #tpu.memory_space<vmem>>, vector<1x32xf32>
    %4 = vector.broadcast %3 : vector<1x32xf32> to vector<16x32xf32>
    %5 = arith.addf %2, %4 : vector<16x32xf32>
    %cst = arith.constant dense<0.000000e+00> : vector<16xf32>
    %6 = vector.multi_reduction <add>, %5, %cst [1] : vector<16x32xf32> to vector<16xf32>
    %7 = vector.shape_cast %6 : vector<16xf32> to vector<16x1xf32>
    %cst_5 = arith.constant 3.200000e+01 : f32
    %8 = vector.broadcast %cst_5 : f32 to vector<16x1xf32>
    %9 = arith.divf %7, %8 : vector<16x1xf32>
    %10 = vector.broadcast %9 : vector<16x1xf32> to vector<16x32xf32>
    %11 = arith.subf %5, %10 : vector<16x32xf32>
    %12 = arith.mulf %11, %11 : vector<16x32xf32>
    %cst_6 = arith.constant dense<0.000000e+00> : vector<16xf32>
    %13 = vector.multi_reduction <add>, %12, %cst_6 [1] : vector<16x32xf32> to vector<16xf32>
    %14 = vector.shape_cast %13 : vector<16xf32> to vector<16x1xf32>
    %cst_7 = arith.constant 3.200000e+01 : f32
    %15 = vector.broadcast %cst_7 : f32 to vector<16x1xf32>
    %16 = arith.divf %14, %15 : vector<16x1xf32>
    %17 = vector.broadcast %9 : vector<16x1xf32> to vector<16x32xf32>
    %18 = arith.subf %5, %17 : vector<16x32xf32>
    %cst_8 = arith.constant 9.99999974E-6 : f32
    %19 = vector.broadcast %cst_8 : f32 to vector<16x1xf32>
    %20 = arith.addf %16, %19 : vector<16x1xf32>
    %21 = math.rsqrt %20 : vector<16x1xf32>
    %22 = vector.broadcast %21 : vector<16x1xf32> to vector<16x32xf32>
    %23 = arith.mulf %18, %22 : vector<16x32xf32>
    %c0_9 = arith.constant 0 : index
    %c0_10 = arith.constant 0 : index
    %24 = vector.load %arg4[%c0_9, %c0_10] : memref<1x32xf32, #tpu.memory_space<vmem>>, vector<1x32xf32>
    %25 = vector.broadcast %24 : vector<1x32xf32> to vector<16x32xf32>
    %26 = arith.mulf %23, %25 : vector<16x32xf32>
    %c0_11 = arith.constant 0 : index
    %c0_12 = arith.constant 0 : index
    %27 = vector.load %arg5[%c0_11, %c0_12] : memref<1x32xf32, #tpu.memory_space<vmem>>, vector<1x32xf32>
    %28 = vector.broadcast %27 : vector<1x32xf32> to vector<16x32xf32>
    %29 = arith.addf %26, %28 : vector<16x32xf32>
    %30 = arith.truncf %29 : vector<16x32xf32> to vector<16x32xbf16>
    %c0_13 = arith.constant 0 : index
    %c0_14 = arith.constant 0 : index
    %31 = vector.load %arg6[%c0_13, %c0_14] : memref<16x32xbf16, #tpu.memory_space<vmem>>, vector<16x32xbf16>
    tpu.vector_store %arg6[%c0_13, %c0_14], %30 {strides = array<i32>} : memref<16x32xbf16, #tpu.memory_space<vmem>>, vector<16x32xbf16>,
    return
  }
  func.func @transform_0(%arg0: i32) -> (i32, i32) {
    %c0_i32 = arith.constant 0 : i32
    %c0_i32_0 = arith.constant 0 : i32
    %c0_i32_1 = arith.constant 0 : i32
    return %c0_i32, %c0_i32_0 : i32, i32
  }
  func.func @transform_1(%arg0: i32) -> (i32, i32) {
    %c0_i32 = arith.constant 0 : i32
    %c0_i32_0 = arith.constant 0 : i32
    %c0_i32_1 = arith.constant 0 : i32
    return %c0_i32, %c0_i32_0 : i32, i32
  }
  func.func @transform_2(%arg0: i32) -> (i32, i32) {
    %c0_i32 = arith.constant 0 : i32
    %c0_i32_0 = arith.constant 0 : i32
    %c0_i32_1 = arith.constant 0 : i32
    return %c0_i32, %c0_i32_0 : i32, i32
  }
  func.func @transform_3(%arg0: i32) -> (i32, i32) {
    %c0_i32 = arith.constant 0 : i32
    %c0_i32_0 = arith.constant 0 : i32
    %c0_i32_1 = arith.constant 0 : i32
    return %c0_i32, %c0_i32_0 : i32, i32
  }
  func.func @transform_4(%arg0: i32) -> (i32, i32) {
    %c0_i32 = arith.constant 0 : i32
    %c0_i32_0 = arith.constant 0 : i32
    %c0_i32_1 = arith.constant 0 : i32
    return %c0_i32, %c0_i32_0 : i32, i32
  }
  func.func @transform_5(%arg0: i32) -> (i32, i32) {
    %c0_i32 = arith.constant 0 : i32
    %c0_i32_0 = arith.constant 0 : i32
    %c0_i32_1 = arith.constant 0 : i32
    return %c0_i32, %c0_i32_0 : i32, i32
  }
}

module attributes {stable_mosaic.version = 11 : i64} {
  func.func @_cls_head_kernel(%arg0: i32, %arg1: memref<2x32xbf16, #tpu.memory_space<vmem>>, %arg2: memref<32x32xbf16, #tpu.memory_space<vmem>>, %arg3: memref<1x32xf32, #tpu.memory_space<vmem>>, %arg4: memref<32x128xbf16, #tpu.memory_space<vmem>>, %arg5: memref<1x128xf32, #tpu.memory_space<vmem>>, %arg6: memref<2x128xf32, #tpu.memory_space<vmem>>) attributes {dimension_semantics = [#tpu.dimension_semantics<arbitrary>], iteration_bounds = array<i64: 1>, scalar_prefetch = 0 : i64, scratch_operands = 0 : i64, tpu.core_type = #tpu.core_type<tc>, window_params = [{pipeline_mode = #tpu.pipeline_mode<synchronous>, transform_indices = @transform_0, window_bounds = array<i64: 2, 32>}, {pipeline_mode = #tpu.pipeline_mode<synchronous>, transform_indices = @transform_1, window_bounds = array<i64: 32, 32>}, {pipeline_mode = #tpu.pipeline_mode<synchronous>, transform_indices = @transform_2, window_bounds = array<i64: 1, 32>}, {pipeline_mode = #tpu.pipeline_mode<synchronous>, transform_indices = @transform_3, window_bounds = array<i64: 32, 128>}, {pipeline_mode = #tpu.pipeline_mode<synchronous>, transform_indices = @transform_4, window_bounds = array<i64: 1, 128>}, {pipeline_mode = #tpu.pipeline_mode<synchronous>, transform_indices = @transform_5, window_bounds = array<i64: 2, 128>}]} {
    %c0 = arith.constant 0 : index
    %c0_0 = arith.constant 0 : index
    %0 = vector.load %arg1[%c0, %c0_0] : memref<2x32xbf16, #tpu.memory_space<vmem>>, vector<2x32xbf16>
    %c0_1 = arith.constant 0 : index
    %c0_2 = arith.constant 0 : index
    %1 = vector.load %arg2[%c0_1, %c0_2] : memref<32x32xbf16, #tpu.memory_space<vmem>>, vector<32x32xbf16>
    %cst = arith.constant dense<0.000000e+00> : vector<2x32xf32>
    %2 = tpu.matmul %0, %1, %cst {dimension_numbers = #tpu.dot_dimension_numbers<[1], [0], [0], [1], [0, 0, 1, 1], [], []>} : vector<2x32xbf16>, vector<32x32xbf16>, vector<2x32xf32> -> vector<2x32xf32>
    %c0_3 = arith.constant 0 : index
    %c0_4 = arith.constant 0 : index
    %3 = vector.load %arg3[%c0_3, %c0_4] : memref<1x32xf32, #tpu.memory_space<vmem>>, vector<1x32xf32>
    %4 = vector.broadcast %3 : vector<1x32xf32> to vector<2x32xf32>
    %5 = arith.addf %2, %4 : vector<2x32xf32>
    %6 = math.tanh %5 : vector<2x32xf32>
    %7 = arith.truncf %6 : vector<2x32xf32> to vector<2x32xbf16>
    %c0_5 = arith.constant 0 : index
    %c0_6 = arith.constant 0 : index
    %8 = vector.load %arg4[%c0_5, %c0_6] : memref<32x128xbf16, #tpu.memory_space<vmem>>, vector<32x128xbf16>
    %cst_7 = arith.constant dense<0.000000e+00> : vector<2x128xf32>
    %9 = tpu.matmul %7, %8, %cst_7 {dimension_numbers = #tpu.dot_dimension_numbers<[1], [0], [0], [1], [0, 0, 1, 1], [], []>} : vector<2x32xbf16>, vector<32x128xbf16>, vector<2x128xf32> -> vector<2x128xf32>
    %c0_8 = arith.constant 0 : index
    %c0_9 = arith.constant 0 : index
    %10 = vector.load %arg5[%c0_8, %c0_9] : memref<1x128xf32, #tpu.memory_space<vmem>>, vector<1x128xf32>
    %11 = vector.broadcast %10 : vector<1x128xf32> to vector<2x128xf32>
    %12 = arith.addf %9, %11 : vector<2x128xf32>
    %c0_10 = arith.constant 0 : index
    %c0_11 = arith.constant 0 : index
    %13 = vector.load %arg6[%c0_10, %c0_11] : memref<2x128xf32, #tpu.memory_space<vmem>>, vector<2x128xf32>
    tpu.vector_store %arg6[%c0_10, %c0_11], %12 {strides = array<i32>} : memref<2x128xf32, #tpu.memory_space<vmem>>, vector<2x128xf32>,
    return
  }
  func.func @transform_0(%arg0: i32) -> (i32, i32) {
    %c0_i32 = arith.constant 0 : i32
    %c0_i32_0 = arith.constant 0 : i32
    %c0_i32_1 = arith.constant 0 : i32
    return %c0_i32, %c0_i32_0 : i32, i32
  }
  func.func @transform_1(%arg0: i32) -> (i32, i32) {
    %c0_i32 = arith.constant 0 : i32
    %c0_i32_0 = arith.constant 0 : i32
    %c0_i32_1 = arith.constant 0 : i32
    return %c0_i32, %c0_i32_0 : i32, i32
  }
  func.func @transform_2(%arg0: i32) -> (i32, i32) {
    %c0_i32 = arith.constant 0 : i32
    %c0_i32_0 = arith.constant 0 : i32
    %c0_i32_1 = arith.constant 0 : i32
    return %c0_i32, %c0_i32_0 : i32, i32
  }
  func.func @transform_3(%arg0: i32) -> (i32, i32) {
    %c0_i32 = arith.constant 0 : i32
    %c0_i32_0 = arith.constant 0 : i32
    %c0_i32_1 = arith.constant 0 : i32
    return %c0_i32, %c0_i32_0 : i32, i32
  }
  func.func @transform_4(%arg0: i32) -> (i32, i32) {
    %c0_i32 = arith.constant 0 : i32
    %c0_i32_0 = arith.constant 0 : i32
    %c0_i32_1 = arith.constant 0 : i32
    return %c0_i32, %c0_i32_0 : i32, i32
  }
  func.func @transform_5(%arg0: i32) -> (i32, i32) {
    %c0_i32 = arith.constant 0 : i32
    %c0_i32_0 = arith.constant 0 : i32
    %c0_i32_1 = arith.constant 0 : i32
    return %c0_i32, %c0_i32_0 : i32, i32
  }
}

module attributes {stable_mosaic.version = 11 : i64} {
  func.func @_encoder_stack_kernel(%arg0: i32, %arg1: i32, %arg2: memref<1x8x32xbf16, #tpu.memory_space<vmem>>, %arg3: memref<1x1x8xf32, #tpu.memory_space<vmem>>, %arg4: memref<1x32x96xbf16, #tpu.memory_space<vmem>>, %arg5: memref<1x1x96xf32, #tpu.memory_space<vmem>>, %arg6: memref<1x32x32xbf16, #tpu.memory_space<vmem>>, %arg7: memref<1x1x32xf32, #tpu.memory_space<vmem>>, %arg8: memref<1x1x32xf32, #tpu.memory_space<vmem>>, %arg9: memref<1x1x32xf32, #tpu.memory_space<vmem>>, %arg10: memref<1x32x64xbf16, #tpu.memory_space<vmem>>, %arg11: memref<1x1x64xf32, #tpu.memory_space<vmem>>, %arg12: memref<1x64x32xbf16, #tpu.memory_space<vmem>>, %arg13: memref<1x1x32xf32, #tpu.memory_space<vmem>>, %arg14: memref<1x1x32xf32, #tpu.memory_space<vmem>>, %arg15: memref<1x1x32xf32, #tpu.memory_space<vmem>>, %arg16: memref<1x1x8x32xbf16, #tpu.memory_space<vmem>>, %arg17: memref<8x32xf32, #tpu.memory_space<vmem>>, %arg18: memref<8x32xbf16, #tpu.memory_space<vmem>>) attributes {dimension_semantics = [#tpu.dimension_semantics<parallel>, #tpu.dimension_semantics<arbitrary>], iteration_bounds = array<i64: 2, 2>, scalar_prefetch = 0 : i64, scratch_operands = 2 : i64, tpu.core_type = #tpu.core_type<tc>, window_params = [{transform_indices = @transform_0, window_bounds = array<i64: 1, 8, 32>}, {transform_indices = @transform_1, window_bounds = array<i64: 1, 1, 8>}, {transform_indices = @transform_2, window_bounds = array<i64: 1, 32, 96>}, {transform_indices = @transform_3, window_bounds = array<i64: 1, 1, 96>}, {transform_indices = @transform_4, window_bounds = array<i64: 1, 32, 32>}, {transform_indices = @transform_5, window_bounds = array<i64: 1, 1, 32>}, {transform_indices = @transform_6, window_bounds = array<i64: 1, 1, 32>}, {transform_indices = @transform_7, window_bounds = array<i64: 1, 1, 32>}, {transform_indices = @transform_8, window_bounds = array<i64: 1, 32, 64>}, {transform_indices = @transform_9, window_bounds = array<i64: 1, 1, 64>}, {transform_indices = @transform_10, window_bounds = array<i64: 1, 64, 32>}, {transform_indices = @transform_11, window_bounds = array<i64: 1, 1, 32>}, {transform_indices = @transform_12, window_bounds = array<i64: 1, 1, 32>}, {transform_indices = @transform_13, window_bounds = array<i64: 1, 1, 32>}, {transform_indices = @transform_14, window_bounds = array<i64: 1, 1, 8, 32>}]} {
    %c0_i32 = arith.constant 0 : i32
    %0 = arith.cmpi eq, %arg1, %c0_i32 : i32
    %1 = arith.extui %0 : i1 to i32
    %c0_i32_0 = arith.constant 0 : i32
    %2 = arith.cmpi ne, %1, %c0_i32_0 : i32
    scf.if %2 {
      %c0_91 = arith.constant 0 : index
      %c0_92 = arith.constant 0 : index
      %c0_93 = arith.constant 0 : index
      %197 = vector.load %arg2[%c0_91, %c0_92, %c0_93] : memref<1x8x32xbf16, #tpu.memory_space<vmem>>, vector<1x8x32xbf16>
      %198 = vector.shape_cast %197 : vector<1x8x32xbf16> to vector<8x32xbf16>
      %199 = arith.extf %198 : vector<8x32xbf16> to vector<8x32xf32>
      %c0_94 = arith.constant 0 : index
      %c0_95 = arith.constant 0 : index
      %200 = vector.load %arg17[%c0_94, %c0_95] : memref<8x32xf32, #tpu.memory_space<vmem>>, vector<8x32xf32>
      tpu.vector_store %arg17[%c0_94, %c0_95], %199 {strides = array<i32>} : memref<8x32xf32, #tpu.memory_space<vmem>>, vector<8x32xf32>,
    } else {
    }
    %c0 = arith.constant 0 : index
    %c0_1 = arith.constant 0 : index
    %3 = vector.load %arg17[%c0, %c0_1] : memref<8x32xf32, #tpu.memory_space<vmem>>, vector<8x32xf32>
    %4 = arith.truncf %3 : vector<8x32xf32> to vector<8x32xbf16>
    %c0_2 = arith.constant 0 : index
    %c0_3 = arith.constant 0 : index
    %c0_4 = arith.constant 0 : index
    %5 = vector.load %arg4[%c0_2, %c0_3, %c0_4] : memref<1x32x96xbf16, #tpu.memory_space<vmem>>, vector<1x32x96xbf16>
    %6 = vector.shape_cast %5 : vector<1x32x96xbf16> to vector<32x96xbf16>
    %cst = arith.constant dense<0.000000e+00> : vector<8x96xf32>
    %7 = tpu.matmul %4, %6, %cst {dimension_numbers = #tpu.dot_dimension_numbers<[1], [0], [0], [1], [0, 0, 1, 1], [], []>} : vector<8x32xbf16>, vector<32x96xbf16>, vector<8x96xf32> -> vector<8x96xf32>
    %c0_5 = arith.constant 0 : index
    %c0_6 = arith.constant 0 : index
    %c0_7 = arith.constant 0 : index
    %8 = vector.load %arg5[%c0_5, %c0_6, %c0_7] : memref<1x1x96xf32, #tpu.memory_space<vmem>>, vector<1x1x96xf32>
    %9 = vector.shape_cast %8 : vector<1x1x96xf32> to vector<1x96xf32>
    %10 = vector.broadcast %9 : vector<1x96xf32> to vector<8x96xf32>
    %11 = arith.addf %7, %10 : vector<8x96xf32>
    %12 = arith.truncf %11 : vector<8x96xf32> to vector<8x96xbf16>
    %c0_8 = arith.constant 0 : index
    %c0_9 = arith.constant 0 : index
    %c0_10 = arith.constant 0 : index
    %13 = vector.load %arg3[%c0_8, %c0_9, %c0_10] : memref<1x1x8xf32, #tpu.memory_space<vmem>>, vector<1x1x8xf32>
    %14 = vector.shape_cast %13 : vector<1x1x8xf32> to vector<1x8xf32>
    %15 = vector.shape_cast %14 : vector<1x8xf32> to vector<1x8xf32>
    %16 = vector.broadcast %15 : vector<1x8xf32> to vector<8x8xf32>
    %17 = vector.extract_strided_slice %12 {offsets = [0, 0], sizes = [8, 8], strides = [1, 1]} : vector<8x96xbf16> to vector<8x8xbf16>
    %18 = vector.extract_strided_slice %12 {offsets = [0, 32], sizes = [8, 8], strides = [1, 1]} : vector<8x96xbf16> to vector<8x8xbf16>
    %19 = vector.extract_strided_slice %12 {offsets = [0, 64], sizes = [8, 8], strides = [1, 1]} : vector<8x96xbf16> to vector<8x8xbf16>
    %cst_11 = arith.constant dense<0.000000e+00> : vector<8x8xf32>
    %20 = tpu.matmul %17, %18, %cst_11 {dimension_numbers = #tpu.dot_dimension_numbers<[1], [1], [0], [0], [0, 0, 1, 0], [], []>} : vector<8x8xbf16>, vector<8x8xbf16>, vector<8x8xf32> -> vector<8x8xf32>
    %cst_12 = arith.constant 0.353553385 : f32
    %21 = vector.broadcast %cst_12 : f32 to vector<8x8xf32>
    %22 = arith.mulf %20, %21 : vector<8x8xf32>
    %23 = arith.addf %22, %16 : vector<8x8xf32>
    %cst_13 = arith.constant dense<0xFF800000> : vector<8xf32>
    %24 = vector.multi_reduction <maximumf>, %23, %cst_13 [1] : vector<8x8xf32> to vector<8xf32>
    %25 = vector.shape_cast %24 : vector<8xf32> to vector<8x1xf32>
    %26 = vector.broadcast %25 : vector<8x1xf32> to vector<8x8xf32>
    %27 = arith.subf %23, %26 : vector<8x8xf32>
    %28 = math.exp %27 : vector<8x8xf32>
    %cst_14 = arith.constant dense<0.000000e+00> : vector<8xf32>
    %29 = vector.multi_reduction <add>, %28, %cst_14 [1] : vector<8x8xf32> to vector<8xf32>
    %30 = vector.shape_cast %29 : vector<8xf32> to vector<8x1xf32>
    %31 = tpu.reciprocal %30 {approx = true} : vector<8x1xf32> -> vector<8x1xf32>
    %32 = vector.broadcast %31 : vector<8x1xf32> to vector<8x8xf32>
    %33 = arith.mulf %28, %32 : vector<8x8xf32>
    %34 = arith.truncf %33 : vector<8x8xf32> to vector<8x8xbf16>
    %cst_15 = arith.constant dense<0.000000e+00> : vector<8x8xf32>
    %35 = tpu.matmul %34, %19, %cst_15 {dimension_numbers = #tpu.dot_dimension_numbers<[1], [0], [0], [1], [0, 0, 1, 1], [], []>} : vector<8x8xbf16>, vector<8x8xbf16>, vector<8x8xf32> -> vector<8x8xf32>
    %36 = arith.truncf %35 : vector<8x8xf32> to vector<8x8xbf16>
    %c0_16 = arith.constant 0 : index
    %c0_17 = arith.constant 0 : index
    %37 = vector.load %arg18[%c0_16, %c0_17] : memref<8x32xbf16, #tpu.memory_space<vmem>>, vector<8x8xbf16>
    tpu.vector_store %arg18[%c0_16, %c0_17], %36 {strides = array<i32>} : memref<8x32xbf16, #tpu.memory_space<vmem>>, vector<8x8xbf16>,
    %38 = vector.extract_strided_slice %12 {offsets = [0, 8], sizes = [8, 8], strides = [1, 1]} : vector<8x96xbf16> to vector<8x8xbf16>
    %39 = vector.extract_strided_slice %12 {offsets = [0, 40], sizes = [8, 8], strides = [1, 1]} : vector<8x96xbf16> to vector<8x8xbf16>
    %40 = vector.extract_strided_slice %12 {offsets = [0, 72], sizes = [8, 8], strides = [1, 1]} : vector<8x96xbf16> to vector<8x8xbf16>
    %cst_18 = arith.constant dense<0.000000e+00> : vector<8x8xf32>
    %41 = tpu.matmul %38, %39, %cst_18 {dimension_numbers = #tpu.dot_dimension_numbers<[1], [1], [0], [0], [0, 0, 1, 0], [], []>} : vector<8x8xbf16>, vector<8x8xbf16>, vector<8x8xf32> -> vector<8x8xf32>
    %cst_19 = arith.constant 0.353553385 : f32
    %42 = vector.broadcast %cst_19 : f32 to vector<8x8xf32>
    %43 = arith.mulf %41, %42 : vector<8x8xf32>
    %44 = arith.addf %43, %16 : vector<8x8xf32>
    %cst_20 = arith.constant dense<0xFF800000> : vector<8xf32>
    %45 = vector.multi_reduction <maximumf>, %44, %cst_20 [1] : vector<8x8xf32> to vector<8xf32>
    %46 = vector.shape_cast %45 : vector<8xf32> to vector<8x1xf32>
    %47 = vector.broadcast %46 : vector<8x1xf32> to vector<8x8xf32>
    %48 = arith.subf %44, %47 : vector<8x8xf32>
    %49 = math.exp %48 : vector<8x8xf32>
    %cst_21 = arith.constant dense<0.000000e+00> : vector<8xf32>
    %50 = vector.multi_reduction <add>, %49, %cst_21 [1] : vector<8x8xf32> to vector<8xf32>
    %51 = vector.shape_cast %50 : vector<8xf32> to vector<8x1xf32>
    %52 = tpu.reciprocal %51 {approx = true} : vector<8x1xf32> -> vector<8x1xf32>
    %53 = vector.broadcast %52 : vector<8x1xf32> to vector<8x8xf32>
    %54 = arith.mulf %49, %53 : vector<8x8xf32>
    %55 = arith.truncf %54 : vector<8x8xf32> to vector<8x8xbf16>
    %cst_22 = arith.constant dense<0.000000e+00> : vector<8x8xf32>
    %56 = tpu.matmul %55, %40, %cst_22 {dimension_numbers = #tpu.dot_dimension_numbers<[1], [0], [0], [1], [0, 0, 1, 1], [], []>} : vector<8x8xbf16>, vector<8x8xbf16>, vector<8x8xf32> -> vector<8x8xf32>
    %57 = arith.truncf %56 : vector<8x8xf32> to vector<8x8xbf16>
    %c0_23 = arith.constant 0 : index
    %c8 = arith.constant 8 : index
    %58 = vector.load %arg18[%c0_23, %c8] : memref<8x32xbf16, #tpu.memory_space<vmem>>, vector<8x8xbf16>
    tpu.vector_store %arg18[%c0_23, %c8], %57 {strides = array<i32>} : memref<8x32xbf16, #tpu.memory_space<vmem>>, vector<8x8xbf16>,
    %59 = vector.extract_strided_slice %12 {offsets = [0, 16], sizes = [8, 8], strides = [1, 1]} : vector<8x96xbf16> to vector<8x8xbf16>
    %60 = vector.extract_strided_slice %12 {offsets = [0, 48], sizes = [8, 8], strides = [1, 1]} : vector<8x96xbf16> to vector<8x8xbf16>
    %61 = vector.extract_strided_slice %12 {offsets = [0, 80], sizes = [8, 8], strides = [1, 1]} : vector<8x96xbf16> to vector<8x8xbf16>
    %cst_24 = arith.constant dense<0.000000e+00> : vector<8x8xf32>
    %62 = tpu.matmul %59, %60, %cst_24 {dimension_numbers = #tpu.dot_dimension_numbers<[1], [1], [0], [0], [0, 0, 1, 0], [], []>} : vector<8x8xbf16>, vector<8x8xbf16>, vector<8x8xf32> -> vector<8x8xf32>
    %cst_25 = arith.constant 0.353553385 : f32
    %63 = vector.broadcast %cst_25 : f32 to vector<8x8xf32>
    %64 = arith.mulf %62, %63 : vector<8x8xf32>
    %65 = arith.addf %64, %16 : vector<8x8xf32>
    %cst_26 = arith.constant dense<0xFF800000> : vector<8xf32>
    %66 = vector.multi_reduction <maximumf>, %65, %cst_26 [1] : vector<8x8xf32> to vector<8xf32>
    %67 = vector.shape_cast %66 : vector<8xf32> to vector<8x1xf32>
    %68 = vector.broadcast %67 : vector<8x1xf32> to vector<8x8xf32>
    %69 = arith.subf %65, %68 : vector<8x8xf32>
    %70 = math.exp %69 : vector<8x8xf32>
    %cst_27 = arith.constant dense<0.000000e+00> : vector<8xf32>
    %71 = vector.multi_reduction <add>, %70, %cst_27 [1] : vector<8x8xf32> to vector<8xf32>
    %72 = vector.shape_cast %71 : vector<8xf32> to vector<8x1xf32>
    %73 = tpu.reciprocal %72 {approx = true} : vector<8x1xf32> -> vector<8x1xf32>
    %74 = vector.broadcast %73 : vector<8x1xf32> to vector<8x8xf32>
    %75 = arith.mulf %70, %74 : vector<8x8xf32>
    %76 = arith.truncf %75 : vector<8x8xf32> to vector<8x8xbf16>
    %cst_28 = arith.constant dense<0.000000e+00> : vector<8x8xf32>
    %77 = tpu.matmul %76, %61, %cst_28 {dimension_numbers = #tpu.dot_dimension_numbers<[1], [0], [0], [1], [0, 0, 1, 1], [], []>} : vector<8x8xbf16>, vector<8x8xbf16>, vector<8x8xf32> -> vector<8x8xf32>
    %78 = arith.truncf %77 : vector<8x8xf32> to vector<8x8xbf16>
    %c0_29 = arith.constant 0 : index
    %c16 = arith.constant 16 : index
    %79 = vector.load %arg18[%c0_29, %c16] : memref<8x32xbf16, #tpu.memory_space<vmem>>, vector<8x8xbf16>
    tpu.vector_store %arg18[%c0_29, %c16], %78 {strides = array<i32>} : memref<8x32xbf16, #tpu.memory_space<vmem>>, vector<8x8xbf16>,
    %80 = vector.extract_strided_slice %12 {offsets = [0, 24], sizes = [8, 8], strides = [1, 1]} : vector<8x96xbf16> to vector<8x8xbf16>
    %81 = vector.extract_strided_slice %12 {offsets = [0, 56], sizes = [8, 8], strides = [1, 1]} : vector<8x96xbf16> to vector<8x8xbf16>
    %82 = vector.extract_strided_slice %12 {offsets = [0, 88], sizes = [8, 8], strides = [1, 1]} : vector<8x96xbf16> to vector<8x8xbf16>
    %cst_30 = arith.constant dense<0.000000e+00> : vector<8x8xf32>
    %83 = tpu.matmul %80, %81, %cst_30 {dimension_numbers = #tpu.dot_dimension_numbers<[1], [1], [0], [0], [0, 0, 1, 0], [], []>} : vector<8x8xbf16>, vector<8x8xbf16>, vector<8x8xf32> -> vector<8x8xf32>
    %cst_31 = arith.constant 0.353553385 : f32
    %84 = vector.broadcast %cst_31 : f32 to vector<8x8xf32>
    %85 = arith.mulf %83, %84 : vector<8x8xf32>
    %86 = arith.addf %85, %16 : vector<8x8xf32>
    %cst_32 = arith.constant dense<0xFF800000> : vector<8xf32>
    %87 = vector.multi_reduction <maximumf>, %86, %cst_32 [1] : vector<8x8xf32> to vector<8xf32>
    %88 = vector.shape_cast %87 : vector<8xf32> to vector<8x1xf32>
    %89 = vector.broadcast %88 : vector<8x1xf32> to vector<8x8xf32>
    %90 = arith.subf %86, %89 : vector<8x8xf32>
    %91 = math.exp %90 : vector<8x8xf32>
    %cst_33 = arith.constant dense<0.000000e+00> : vector<8xf32>
    %92 = vector.multi_reduction <add>, %91, %cst_33 [1] : vector<8x8xf32> to vector<8xf32>
    %93 = vector.shape_cast %92 : vector<8xf32> to vector<8x1xf32>
    %94 = tpu.reciprocal %93 {approx = true} : vector<8x1xf32> -> vector<8x1xf32>
    %95 = vector.broadcast %94 : vector<8x1xf32> to vector<8x8xf32>
    %96 = arith.mulf %91, %95 : vector<8x8xf32>
    %97 = arith.truncf %96 : vector<8x8xf32> to vector<8x8xbf16>
    %cst_34 = arith.constant dense<0.000000e+00> : vector<8x8xf32>
    %98 = tpu.matmul %97, %82, %cst_34 {dimension_numbers = #tpu.dot_dimension_numbers<[1], [0], [0], [1], [0, 0, 1, 1], [], []>} : vector<8x8xbf16>, vector<8x8xbf16>, vector<8x8xf32> -> vector<8x8xf32>
    %99 = arith.truncf %98 : vector<8x8xf32> to vector<8x8xbf16>
    %c0_35 = arith.constant 0 : index
    %c24 = arith.constant 24 : index
    %100 = vector.load %arg18[%c0_35, %c24] : memref<8x32xbf16, #tpu.memory_space<vmem>>, vector<8x8xbf16>
    tpu.vector_store %arg18[%c0_35, %c24], %99 {strides = array<i32>} : memref<8x32xbf16, #tpu.memory_space<vmem>>, vector<8x8xbf16>,
    %c0_36 = arith.constant 0 : index
    %c0_37 = arith.constant 0 : index
    %101 = vector.load %arg18[%c0_36, %c0_37] : memref<8x32xbf16, #tpu.memory_space<vmem>>, vector<8x32xbf16>
    %c0_38 = arith.constant 0 : index
    %c0_39 = arith.constant 0 : index
    %c0_40 = arith.constant 0 : index
    %102 = vector.load %arg6[%c0_38, %c0_39, %c0_40] : memref<1x32x32xbf16, #tpu.memory_space<vmem>>, vector<1x32x32xbf16>
    %103 = vector.shape_cast %102 : vector<1x32x32xbf16> to vector<32x32xbf16>
    %cst_41 = arith.constant dense<0.000000e+00> : vector<8x32xf32>
    %104 = tpu.matmul %101, %103, %cst_41 {dimension_numbers = #tpu.dot_dimension_numbers<[1], [0], [0], [1], [0, 0, 1, 1], [], []>} : vector<8x32xbf16>, vector<32x32xbf16>, vector<8x32xf32> -> vector<8x32xf32>
    %c0_42 = arith.constant 0 : index
    %c0_43 = arith.constant 0 : index
    %c0_44 = arith.constant 0 : index
    %105 = vector.load %arg7[%c0_42, %c0_43, %c0_44] : memref<1x1x32xf32, #tpu.memory_space<vmem>>, vector<1x1x32xf32>
    %106 = vector.shape_cast %105 : vector<1x1x32xf32> to vector<1x32xf32>
    %107 = vector.broadcast %106 : vector<1x32xf32> to vector<8x32xf32>
    %108 = arith.addf %104, %107 : vector<8x32xf32>
    %109 = arith.addf %108, %3 : vector<8x32xf32>
    %c0_45 = arith.constant 0 : index
    %c0_46 = arith.constant 0 : index
    %c0_47 = arith.constant 0 : index
    %110 = vector.load %arg8[%c0_45, %c0_46, %c0_47] : memref<1x1x32xf32, #tpu.memory_space<vmem>>, vector<1x1x32xf32>
    %111 = vector.shape_cast %110 : vector<1x1x32xf32> to vector<1x32xf32>
    %c0_48 = arith.constant 0 : index
    %c0_49 = arith.constant 0 : index
    %c0_50 = arith.constant 0 : index
    %112 = vector.load %arg9[%c0_48, %c0_49, %c0_50] : memref<1x1x32xf32, #tpu.memory_space<vmem>>, vector<1x1x32xf32>
    %113 = vector.shape_cast %112 : vector<1x1x32xf32> to vector<1x32xf32>
    %cst_51 = arith.constant dense<0.000000e+00> : vector<8xf32>
    %114 = vector.multi_reduction <add>, %109, %cst_51 [1] : vector<8x32xf32> to vector<8xf32>
    %115 = vector.shape_cast %114 : vector<8xf32> to vector<8x1xf32>
    %cst_52 = arith.constant 3.200000e+01 : f32
    %116 = vector.broadcast %cst_52 : f32 to vector<8x1xf32>
    %117 = arith.divf %115, %116 : vector<8x1xf32>
    %118 = vector.broadcast %117 : vector<8x1xf32> to vector<8x32xf32>
    %119 = arith.subf %109, %118 : vector<8x32xf32>
    %120 = arith.mulf %119, %119 : vector<8x32xf32>
    %cst_53 = arith.constant dense<0.000000e+00> : vector<8xf32>
    %121 = vector.multi_reduction <add>, %120, %cst_53 [1] : vector<8x32xf32> to vector<8xf32>
    %122 = vector.shape_cast %121 : vector<8xf32> to vector<8x1xf32>
    %cst_54 = arith.constant 3.200000e+01 : f32
    %123 = vector.broadcast %cst_54 : f32 to vector<8x1xf32>
    %124 = arith.divf %122, %123 : vector<8x1xf32>
    %125 = vector.broadcast %117 : vector<8x1xf32> to vector<8x32xf32>
    %126 = arith.subf %109, %125 : vector<8x32xf32>
    %cst_55 = arith.constant 9.99999974E-6 : f32
    %127 = vector.broadcast %cst_55 : f32 to vector<8x1xf32>
    %128 = arith.addf %124, %127 : vector<8x1xf32>
    %129 = math.rsqrt %128 : vector<8x1xf32>
    %130 = vector.broadcast %129 : vector<8x1xf32> to vector<8x32xf32>
    %131 = arith.mulf %126, %130 : vector<8x32xf32>
    %132 = vector.broadcast %111 : vector<1x32xf32> to vector<8x32xf32>
    %133 = arith.mulf %131, %132 : vector<8x32xf32>
    %134 = vector.broadcast %113 : vector<1x32xf32> to vector<8x32xf32>
    %135 = arith.addf %133, %134 : vector<8x32xf32>
    %136 = arith.truncf %135 : vector<8x32xf32> to vector<8x32xbf16>
    %c0_56 = arith.constant 0 : index
    %c0_57 = arith.constant 0 : index
    %c0_58 = arith.constant 0 : index
    %137 = vector.load %arg10[%c0_56, %c0_57, %c0_58] : memref<1x32x64xbf16, #tpu.memory_space<vmem>>, vector<1x32x64xbf16>
    %138 = vector.shape_cast %137 : vector<1x32x64xbf16> to vector<32x64xbf16>
    %cst_59 = arith.constant dense<0.000000e+00> : vector<8x64xf32>
    %139 = tpu.matmul %136, %138, %cst_59 {dimension_numbers = #tpu.dot_dimension_numbers<[1], [0], [0], [1], [0, 0, 1, 1], [], []>} : vector<8x32xbf16>, vector<32x64xbf16>, vector<8x64xf32> -> vector<8x64xf32>
    %c0_60 = arith.constant 0 : index
    %c0_61 = arith.constant 0 : index
    %c0_62 = arith.constant 0 : index
    %140 = vector.load %arg11[%c0_60, %c0_61, %c0_62] : memref<1x1x64xf32, #tpu.memory_space<vmem>>, vector<1x1x64xf32>
    %141 = vector.shape_cast %140 : vector<1x1x64xf32> to vector<1x64xf32>
    %142 = vector.broadcast %141 : vector<1x64xf32> to vector<8x64xf32>
    %143 = arith.addf %139, %142 : vector<8x64xf32>
    %cst_63 = arith.constant 5.000000e-01 : f32
    %144 = vector.broadcast %cst_63 : f32 to vector<8x64xf32>
    %145 = arith.mulf %144, %143 : vector<8x64xf32>
    %cst_64 = arith.constant 4.471500e-02 : f32
    %146 = vector.broadcast %cst_64 : f32 to vector<8x64xf32>
    %147 = arith.mulf %146, %143 : vector<8x64xf32>
    %148 = arith.mulf %147, %143 : vector<8x64xf32>
    %149 = arith.mulf %148, %143 : vector<8x64xf32>
    %150 = arith.addf %143, %149 : vector<8x64xf32>
    %cst_65 = arith.constant 0.797884583 : f32
    %151 = vector.broadcast %cst_65 : f32 to vector<8x64xf32>
    %152 = arith.mulf %151, %150 : vector<8x64xf32>
    %153 = math.tanh %152 : vector<8x64xf32>
    %cst_66 = arith.constant 1.000000e+00 : f32
    %154 = vector.broadcast %cst_66 : f32 to vector<8x64xf32>
    %155 = arith.addf %154, %153 : vector<8x64xf32>
    %156 = arith.mulf %145, %155 : vector<8x64xf32>
    %157 = arith.truncf %156 : vector<8x64xf32> to vector<8x64xbf16>
    %c0_67 = arith.constant 0 : index
    %c0_68 = arith.constant 0 : index
    %c0_69 = arith.constant 0 : index
    %158 = vector.load %arg12[%c0_67, %c0_68, %c0_69] : memref<1x64x32xbf16, #tpu.memory_space<vmem>>, vector<1x64x32xbf16>
    %159 = vector.shape_cast %158 : vector<1x64x32xbf16> to vector<64x32xbf16>
    %cst_70 = arith.constant dense<0.000000e+00> : vector<8x32xf32>
    %160 = tpu.matmul %157, %159, %cst_70 {dimension_numbers = #tpu.dot_dimension_numbers<[1], [0], [0], [1], [0, 0, 1, 1], [], []>} : vector<8x64xbf16>, vector<64x32xbf16>, vector<8x32xf32> -> vector<8x32xf32>
    %c0_71 = arith.constant 0 : index
    %c0_72 = arith.constant 0 : index
    %c0_73 = arith.constant 0 : index
    %161 = vector.load %arg13[%c0_71, %c0_72, %c0_73] : memref<1x1x32xf32, #tpu.memory_space<vmem>>, vector<1x1x32xf32>
    %162 = vector.shape_cast %161 : vector<1x1x32xf32> to vector<1x32xf32>
    %163 = vector.broadcast %162 : vector<1x32xf32> to vector<8x32xf32>
    %164 = arith.addf %160, %163 : vector<8x32xf32>
    %165 = arith.addf %164, %135 : vector<8x32xf32>
    %c0_74 = arith.constant 0 : index
    %c0_75 = arith.constant 0 : index
    %c0_76 = arith.constant 0 : index
    %166 = vector.load %arg14[%c0_74, %c0_75, %c0_76] : memref<1x1x32xf32, #tpu.memory_space<vmem>>, vector<1x1x32xf32>
    %167 = vector.shape_cast %166 : vector<1x1x32xf32> to vector<1x32xf32>
    %c0_77 = arith.constant 0 : index
    %c0_78 = arith.constant 0 : index
    %c0_79 = arith.constant 0 : index
    %168 = vector.load %arg15[%c0_77, %c0_78, %c0_79] : memref<1x1x32xf32, #tpu.memory_space<vmem>>, vector<1x1x32xf32>
    %169 = vector.shape_cast %168 : vector<1x1x32xf32> to vector<1x32xf32>
    %cst_80 = arith.constant dense<0.000000e+00> : vector<8xf32>
    %170 = vector.multi_reduction <add>, %165, %cst_80 [1] : vector<8x32xf32> to vector<8xf32>
    %171 = vector.shape_cast %170 : vector<8xf32> to vector<8x1xf32>
    %cst_81 = arith.constant 3.200000e+01 : f32
    %172 = vector.broadcast %cst_81 : f32 to vector<8x1xf32>
    %173 = arith.divf %171, %172 : vector<8x1xf32>
    %174 = vector.broadcast %173 : vector<8x1xf32> to vector<8x32xf32>
    %175 = arith.subf %165, %174 : vector<8x32xf32>
    %176 = arith.mulf %175, %175 : vector<8x32xf32>
    %cst_82 = arith.constant dense<0.000000e+00> : vector<8xf32>
    %177 = vector.multi_reduction <add>, %176, %cst_82 [1] : vector<8x32xf32> to vector<8xf32>
    %178 = vector.shape_cast %177 : vector<8xf32> to vector<8x1xf32>
    %cst_83 = arith.constant 3.200000e+01 : f32
    %179 = vector.broadcast %cst_83 : f32 to vector<8x1xf32>
    %180 = arith.divf %178, %179 : vector<8x1xf32>
    %181 = vector.broadcast %173 : vector<8x1xf32> to vector<8x32xf32>
    %182 = arith.subf %165, %181 : vector<8x32xf32>
    %cst_84 = arith.constant 9.99999974E-6 : f32
    %183 = vector.broadcast %cst_84 : f32 to vector<8x1xf32>
    %184 = arith.addf %180, %183 : vector<8x1xf32>
    %185 = math.rsqrt %184 : vector<8x1xf32>
    %186 = vector.broadcast %185 : vector<8x1xf32> to vector<8x32xf32>
    %187 = arith.mulf %182, %186 : vector<8x32xf32>
    %188 = vector.broadcast %167 : vector<1x32xf32> to vector<8x32xf32>
    %189 = arith.mulf %187, %188 : vector<8x32xf32>
    %190 = vector.broadcast %169 : vector<1x32xf32> to vector<8x32xf32>
    %191 = arith.addf %189, %190 : vector<8x32xf32>
    %c0_85 = arith.constant 0 : index
    %c0_86 = arith.constant 0 : index
    %192 = vector.load %arg17[%c0_85, %c0_86] : memref<8x32xf32, #tpu.memory_space<vmem>>, vector<8x32xf32>
    tpu.vector_store %arg17[%c0_85, %c0_86], %191 {strides = array<i32>} : memref<8x32xf32, #tpu.memory_space<vmem>>, vector<8x32xf32>,
    %193 = arith.truncf %191 : vector<8x32xf32> to vector<8x32xbf16>
    %c0_87 = arith.constant 0 : index
    %c0_88 = arith.constant 0 : index
    %c0_89 = arith.constant 0 : index
    %c0_90 = arith.constant 0 : index
    %194 = vector.load %arg16[%c0_87, %c0_88, %c0_89, %c0_90] : memref<1x1x8x32xbf16, #tpu.memory_space<vmem>>, vector<1x1x8x32xbf16>
    %195 = vector.shape_cast %194 : vector<1x1x8x32xbf16> to vector<8x32xbf16>
    %196 = vector.shape_cast %193 : vector<8x32xbf16> to vector<1x1x8x32xbf16>
    tpu.vector_store %arg16[%c0_87, %c0_88, %c0_89, %c0_90], %196 {strides = array<i32>} : memref<1x1x8x32xbf16, #tpu.memory_space<vmem>>, vector<1x1x8x32xbf16>,
    return
  }
  func.func @transform_0(%arg0: i32, %arg1: i32) -> (i32, i32, i32) {
    %c0_i32 = arith.constant 0 : i32
    %c0_i32_0 = arith.constant 0 : i32
    %c0_i32_1 = arith.constant 0 : i32
    return %arg0, %c0_i32, %c0_i32_0 : i32, i32, i32
  }
  func.func @transform_1(%arg0: i32, %arg1: i32) -> (i32, i32, i32) {
    %c0_i32 = arith.constant 0 : i32
    %c0_i32_0 = arith.constant 0 : i32
    %c0_i32_1 = arith.constant 0 : i32
    return %arg0, %c0_i32, %c0_i32_0 : i32, i32, i32
  }
  func.func @transform_2(%arg0: i32, %arg1: i32) -> (i32, i32, i32) {
    %c0_i32 = arith.constant 0 : i32
    %c0_i32_0 = arith.constant 0 : i32
    %c0_i32_1 = arith.constant 0 : i32
    return %arg1, %c0_i32, %c0_i32_0 : i32, i32, i32
  }
  func.func @transform_3(%arg0: i32, %arg1: i32) -> (i32, i32, i32) {
    %c0_i32 = arith.constant 0 : i32
    %c0_i32_0 = arith.constant 0 : i32
    %c0_i32_1 = arith.constant 0 : i32
    return %arg1, %c0_i32, %c0_i32_0 : i32, i32, i32
  }
  func.func @transform_4(%arg0: i32, %arg1: i32) -> (i32, i32, i32) {
    %c0_i32 = arith.constant 0 : i32
    %c0_i32_0 = arith.constant 0 : i32
    %c0_i32_1 = arith.constant 0 : i32
    return %arg1, %c0_i32, %c0_i32_0 : i32, i32, i32
  }
  func.func @transform_5(%arg0: i32, %arg1: i32) -> (i32, i32, i32) {
    %c0_i32 = arith.constant 0 : i32
    %c0_i32_0 = arith.constant 0 : i32
    %c0_i32_1 = arith.constant 0 : i32
    return %arg1, %c0_i32, %c0_i32_0 : i32, i32, i32
  }
  func.func @transform_6(%arg0: i32, %arg1: i32) -> (i32, i32, i32) {
    %c0_i32 = arith.constant 0 : i32
    %c0_i32_0 = arith.constant 0 : i32
    %c0_i32_1 = arith.constant 0 : i32
    return %arg1, %c0_i32, %c0_i32_0 : i32, i32, i32
  }
  func.func @transform_7(%arg0: i32, %arg1: i32) -> (i32, i32, i32) {
    %c0_i32 = arith.constant 0 : i32
    %c0_i32_0 = arith.constant 0 : i32
    %c0_i32_1 = arith.constant 0 : i32
    return %arg1, %c0_i32, %c0_i32_0 : i32, i32, i32
  }
  func.func @transform_8(%arg0: i32, %arg1: i32) -> (i32, i32, i32) {
    %c0_i32 = arith.constant 0 : i32
    %c0_i32_0 = arith.constant 0 : i32
    %c0_i32_1 = arith.constant 0 : i32
    return %arg1, %c0_i32, %c0_i32_0 : i32, i32, i32
  }
  func.func @transform_9(%arg0: i32, %arg1: i32) -> (i32, i32, i32) {
    %c0_i32 = arith.constant 0 : i32
    %c0_i32_0 = arith.constant 0 : i32
    %c0_i32_1 = arith.constant 0 : i32
    return %arg1, %c0_i32, %c0_i32_0 : i32, i32, i32
  }
  func.func @transform_10(%arg0: i32, %arg1: i32) -> (i32, i32, i32) {
    %c0_i32 = arith.constant 0 : i32
    %c0_i32_0 = arith.constant 0 : i32
    %c0_i32_1 = arith.constant 0 : i32
    return %arg1, %c0_i32, %c0_i32_0 : i32, i32, i32
  }
  func.func @transform_11(%arg0: i32, %arg1: i32) -> (i32, i32, i32) {
    %c0_i32 = arith.constant 0 : i32
    %c0_i32_0 = arith.constant 0 : i32
    %c0_i32_1 = arith.constant 0 : i32
    return %arg1, %c0_i32, %c0_i32_0 : i32, i32, i32
  }
  func.func @transform_12(%arg0: i32, %arg1: i32) -> (i32, i32, i32) {
    %c0_i32 = arith.constant 0 : i32
    %c0_i32_0 = arith.constant 0 : i32
    %c0_i32_1 = arith.constant 0 : i32
    return %arg1, %c0_i32, %c0_i32_0 : i32, i32, i32
  }
  func.func @transform_13(%arg0: i32, %arg1: i32) -> (i32, i32, i32) {
    %c0_i32 = arith.constant 0 : i32
    %c0_i32_0 = arith.constant 0 : i32
    %c0_i32_1 = arith.constant 0 : i32
    return %arg1, %c0_i32, %c0_i32_0 : i32, i32, i32
  }
  func.func @transform_14(%arg0: i32, %arg1: i32) -> (i32, i32, i32, i32) {
    %c0_i32 = arith.constant 0 : i32
    %c0_i32_0 = arith.constant 0 : i32
    %c0_i32_1 = arith.constant 0 : i32
    return %arg1, %arg0, %c0_i32, %c0_i32_0 : i32, i32, i32, i32
  }
}

</mosaic_0001>

<bundles_post_ra>
// kernel: roberta_forward.3
= control target key start
LH: loop header
LB: loop body
LE: loop exit
PB: predicated region body
PF: predicated region fallthrough
CT: control target
= control target key end

     0   :  { %vm35_vm0 = vcmask 261120   ;;  %vm89_vm1 = vcmask 257024   ;;  %s168_s0 = inlined_call_operand.vmem [shape: f32[16,32], index: 0, kind: input, shape index: {}]   ;;  %s169_s1 = inlined_call_operand.vmem [shape: f32[16,32], index: 1, kind: input, shape index: {}]   ;;  %s170_s2 = inlined_call_operand.vmem [shape: f32[1,32], index: 2, kind: input, shape index: {}]   ;;  %s171_s3 = inlined_call_operand.vmem [shape: f32[1,32], index: 3, kind: input, shape index: {}]   ;;  %s172_s4 = inlined_call_operand.vmem [shape: f32[1,32], index: 4, kind: input, shape index: {}]   ;;  %s173_s5 = inlined_call_operand.vmem [shape: bf16[16,32], index: 5, kind: output, shape index: {}]  }
   0x1   :  { %v20_v0 = vld [vmem:[%s168_s0] sm:$0xff]  ;;  %v21_v4 = vld [vmem:[%s168_s0 + $0x8] sm:$0xff] }
   0x2   :  { %v22_v1 = vld [vmem:[%s169_s1] sm:$0xff]  ;;  %v23_v5 = vld [vmem:[%s169_s1 + $0x8] sm:$0xff] }
   0x3   :  { %v96_v2 = vld [vmem:[%s170_s2] ss:$0 sm:$0xff]  ;;  %v24_v3 = vadd.f32 %v22_v1, %v20_v0  ;;  %v25_v6 = vadd.f32 %v23_v5, %v21_v4 }
   0x4   :  { %v97_v28 = vld [vmem:[%s171_s3] ss:$0 sm:$0xff] }
   0x5   :  { %v33_v7 = vadd.f32 %v96_v2, %v24_v3  ;;  %v34_v8 = vadd.f32 %v96_v2, %v25_v6  ;;  %v98_v30 = vld [vmem:[%s172_s4] ss:$0 sm:$0xff] }
   0x7   :  { %v36_v9 = vsel %vm35_vm0, %v33_v7, 0.0  ;;  %v39_v10 = vsel %vm35_vm0, %v34_v8, 0.0 }
   0x8   :  { %37 = vadd.xlane.f32.xlu0 %v36_v9 }
   0xc   :  { %40 = vadd.xlane.f32.xlu0 %v39_v10 }
  0x95   :  { %v38_v11 = vpop.xlane.xlu0 %37 }
  0x96   :  { %v43_v12 = vmul.f32 0.03125, %v38_v11 }
  0x98   :  { %v45_v13 = vsub.f32 %v33_v7, %v43_v12 }
  0x99   :  { %v41_v14 = vpop.xlane.xlu0 %40 }
  0x9a   :  { %v44_v15 = vmul.f32 0.03125, %v41_v14  ;;  %v47_v16 = vmul.f32 %v45_v13, %v45_v13 }
  0x9c   :  { %v46_v17 = vsub.f32 %v34_v8, %v44_v15  ;;  %v49_v18 = vsel %vm35_vm0, %v47_v16, 0.0 }
  0x9d   :  { %50 = vadd.xlane.f32.xlu1 %v49_v18 }
  0x9e   :  { %v48_v19 = vmul.f32 %v46_v17, %v46_v17 }
  0xa0   :  { %v52_v20 = vsel %vm35_vm0, %v48_v19, 0.0 }
  0xa1   :  { %53 = vadd.xlane.f32.xlu1 %v52_v20 }
 0x12a   :  { %v51_v21 = vpop.xlane.xlu1 %50 }
 0x12b   :  { %v55_v22 = vmul.f32 0.03125, %v51_v21 }
 0x12d   :  { %v57_v23 = vadd.f32 1e-05, %v55_v22 }
 0x12e   :  { %v54_v24 = vpop.xlane.xlu1 %53 }
 0x12f   :  { %103 = vrsqrt.f32 %v57_v23  ;;  %v56_v25 = vmul.f32 0.03125, %v54_v24 }
 0x131   :  { %v58_v26 = vadd.f32 1e-05, %v56_v25 }
 0x133   :  { %105 = vrsqrt.f32 %v58_v26 }
 0x139   :  { %v104_v27 = vpop.eup %103 }
 0x13a   :  { %v61_v29 = vmul.f32 %v104_v27, %v45_v13 }
 0x13c   :  { %v70_v31 = vmul.f32 %v97_v28, %v61_v29 }
 0x13d   :  { %v106_v32 = vpop.eup %105 }
 0x13e   :  { %v79_v33 = vadd.f32 %v98_v30, %v70_v31  ;;  %v62_v34 = vmul.f32 %v106_v32, %v46_v17 }
 0x140   :  { %v101_v35 = vpack.c.bf16 %v79_v33, %v79_v33  ;;  %v71_v36 = vmul.f32 %v97_v28, %v62_v34 }
 0x142   :  { %90 = vst.msk [vmem:[%s173_s5] sm:$0xf] %vm89_vm1, %v101_v35  ;;  %v80_v37 = vadd.f32 %v98_v30, %v71_v36 }
 0x144   :  { %v102_v38 = vpack.c.bf16 %v80_v37, %v80_v37 }
 0x146   :  { %91 = vst.msk [vmem:[%s173_s5 + $0x4] sm:$0xf] %vm89_vm1, %v102_v38 }

// kernel: roberta_forward.5
= control target key start
LH: loop header
LB: loop body
LE: loop exit
PB: predicated region body
PF: predicated region fallthrough
CT: control target
= control target key end

     0   :  { %v236_v1 = vmov 0.0   ;;  %vm237_vm0 = vmmov 0   ;;  %s304_s0 = inlined_call_operand.vmem [shape: bf16[2,32], index: 0, kind: input, shape index: {}]   ;;  %s305_s1 = inlined_call_operand.vmem [shape: bf16[32,32], index: 1, kind: input, shape index: {}]   ;;  %s306_s2 = inlined_call_operand.vmem [shape: f32[1,32], index: 2, kind: input, shape index: {}]   ;;  %s307_s3 = inlined_call_operand.vmem [shape: bf16[32,128], index: 3, kind: input, shape index: {}]   ;;  %s308_s4 = inlined_call_operand.vmem [shape: f32[1,128], index: 4, kind: input, shape index: {}]   ;;  %s309_s5 = inlined_call_operand.hbm [shape: f32[2,128], index: 5, kind: output, shape index: {}]  }
   0x1   :  { %v206_v0 = vld [vmem:[%s305_s1] sm:$0xff]   ;;  %187 = vmatprep.subr.bf16.mxu0 %v236_v1  ;;  %195 = vmatprep.subr.bf16.mxu1 %v236_v1  ;;  %v207_v2 = vld [vmem:[%s305_s1 + $0x8] sm:$0xff]  }
   0x2   :  { %188 = vmatpush3.bf16.msra.mxu0 %v206_v0  ;;  %191 = vmatprep.mubr.msk.bf16.mxu0 %vm237_vm0, %v236_v1 }
   0x3   :  { %189 = vmatprep.subr.bf16.mxu0 %v236_v1  ;;  %199 = vmatprep.mubr.msk.bf16.mxu1 %vm237_vm0, %v236_v1 }
   0x4   :  { %10 = vsyncpa [#allocation3], 0  ;;  %v22_v3 = vld [vmem:[%s304_s0] sm:$0x1]  ;;  %vm46_vm1 = vcmask 261120   ;;  %v209_v5 = vld [vmem:[%s307_s3 + $0x8] sm:$0xff]  }
   0x5   :  { %v208_v4 = vld [vmem:[%s307_s3] sm:$0xff]   ;;  %s238_s3 = smov [#allocation2]  }
   0x6   :  { %190 = vmatpush3.bf16.msra.mxu0 %v207_v2  ;;  %196 = vmatpush3.bf16.msra.mxu1 %v208_v4  ;;  %v173_v6 = vld [vmem:[%s306_s2] ss:$0 sm:$0xff]  ;;  %s165_s30 = sshll.u32 %s238_s3, 4  ;;  %s166_s30 = int_to_ptr.vmem [resolvable:$true] %s165_s30 }
   0x7   :  { %197 = vmatprep.subr.bf16.mxu1 %v236_v1  ;;  %v177_v14 = vld [vmem:[%s308_s4] ss:$0 sm:$0xff]  ;;  %s212_s2 = scalar_lea.vmem %s166_s30, 32  ;;  %p217_p1 = scmp.lt.s32.totalorder %s166_s30, %s166_s30 }
   0x8   :  { %p213_p0 = scmp.ne.s32.totalorder %s166_s30, %s212_s2  ;;  %p218_p2 = scmp.lt.s32.totalorder %s212_s2, %s212_s2 }
   0x9   :  { %192 = vmatmul.mubr.msk.bf16.vlgmr.msra.gmra.mrb[0].mxu0 %vm46_vm1, %v22_v3 }
   0xa   :  { %198 = vmatpush3.bf16.msra.mxu1 %v209_v5  ;;  %p219_p3 = por %p218_p2, %p217_p1 }
   0xc   :  { %p220_p4 = pnand %p219_p3, %p213_p0 }
  0xdc   :  { %v84_v7 = vpop.f32.mrb[0].mxu0 }
  0xdd   :  { %v85_v8 = vadd.f32 %v173_v6, %v84_v7  ;;  %v193_v9 = vpop.f32.mrb[1].mxu0 }
  0xde   :  { %v87_v10 = vpop.f32.mrb[2].mxu0 }
  0xdf   :  { %210 = vtanh.f32 %v85_v8  ;;  %v194_v11 = vpop.f32.mrb[3].mxu0 }
  0xe9   :  { %v211_v12 = vpop.eup %210 }
  0xea   :  { %v91_v13 = vpack.c.bf16 %v211_v12, %v211_v12 }
  0xec   :  { %200 = vmatmul.mubr.msk.bf16.vlgmr.msra.gmra.mrb[0].mxu1 %vm46_vm1, %v91_v13 }
 0x1bf   :  { %v152_v15 = vpop.f32.mrb[0].mxu1 }
 0x1c0   :  { %v153_v16 = vadd.f32 %v177_v14, %v152_v15  ;;  %v201_v17 = vpop.f32.mrb[1].mxu1 }
 0x1c1   :  { %v155_v18 = vpop.f32.mrb[2].mxu1 }
 0x1c2   :  { %158 = vst [vmem:[#allocation2] sm:$0x3] %v153_v16  ;;  %v202_v19 = vpop.f32.mrb[3].mxu1 }
 0x1c3   :  { %223 = shalt.err (!%p220_p4)
}
 0x1c4   :  { %s224_s4 = scalar_lea.hbm %s309_s5, 32 }
 0x1c5   :  { %p225_p5 = scmp.ne.s32.totalorder %s309_s5, %s224_s4  ;;  %p228_p6 = scmp.lt.u32.totalorder %s224_s4, %s309_s5 }
 0x1c7   :  { %p230_p7 = pnand %p228_p6, %p225_p5 }
 0x1c9   :  { %233 = shalt.err (!%p230_p7)
}
 0x1ca   :  { %168 = dma.vmem_to_hbm [thread:$0]  %s166_s30, 32, %s309_s5, [#allocation3]  }
 0x1cb   :  { %234 = dma.done.wait [#allocation3], 32  }
 0x1cc   :  { %235 = vsyncadd [#allocation3], 4294967264 }
 0x1cd   :  { %172 = vsyncpa [#allocation3], 1 }

// kernel: roberta_forward.4
= control target key start
LH: loop header
LB: loop body
LE: loop exit
PB: predicated region body
PF: predicated region fallthrough
CT: control target
= control target key end

     0   :  { %s2150_s29 = smov 0   ;;  %s2152_s30 = smov 0   ;;  %s2418_s0 = inlined_call_operand.vmem [shape: bf16[2,8,32], index: 0, kind: input, shape index: {}]   ;;  %s2419_s1 = inlined_call_operand.vmem [shape: f32[2,1,8], index: 1, kind: input, shape index: {}]   ;;  %s2420_s2 = inlined_call_operand.vmem [shape: bf16[2,32,96], index: 2, kind: input, shape index: {}]   ;;  %s2421_s3 = inlined_call_operand.vmem [shape: f32[2,1,96], index: 3, kind: input, shape index: {}]   ;;  %s2422_s4 = inlined_call_operand.vmem [shape: bf16[2,32,32], index: 4, kind: input, shape index: {}]   ;;  %s2423_s5 = inlined_call_operand.vmem [shape: f32[2,1,32], index: 5, kind: input, shape index: {}]   ;;  %s2424_s6 = inlined_call_operand.vmem [shape: f32[2,1,32], index: 6, kind: input, shape index: {}]   ;;  %s2425_s7 = inlined_call_operand.vmem [shape: f32[2,1,32], index: 7, kind: input, shape index: {}]   ;;  %s2426_s8 = inlined_call_operand.vmem [shape: bf16[2,32,64], index: 8, kind: input, shape index: {}]   ;;  %s2427_s9 = inlined_call_operand.vmem [shape: f32[2,1,64], index: 9, kind: input, shape index: {}]   ;;  %s2428_s10 = inlined_call_operand.vmem [shape: bf16[2,64,32], index: 10, kind: input, shape index: {}]   ;;  %s2429_s11 = inlined_call_operand.vmem [shape: f32[2,1,32], index: 11, kind: input, shape index: {}]   ;;  %s2430_s12 = inlined_call_operand.vmem [shape: f32[2,1,32], index: 12, kind: input, shape index: {}]   ;;  %s2431_s13 = inlined_call_operand.vmem [shape: f32[2,1,32], index: 13, kind: input, shape index: {}]   ;;  %s2432_s14 = inlined_call_operand.vmem [shape: bf16[2,2,8,32], index: 14, kind: output, shape index: {}]  }
   0x1   :  { %2437 = sst [smem:[#allocation10_spill]] %s2418_s0  ;;  %s2154_s15 = smov 0  }
   0x2   :  { %2438 = sst [smem:[#allocation11_spill]] %s2419_s1  ;;  %s2156_s16 = smov 0  }
   0x3   :  { %2439 = sst [smem:[#allocation12_spill]] %s2420_s2  ;;  %s2158_s17 = smov 0  }
   0x4   :  { %2440 = sst [smem:[#allocation13_spill]] %s2422_s4 }
   0x5   :  { %2441 = sst [smem:[#allocation14_spill]] %s2425_s7 }
   0x6   :  { %2442 = sst [smem:[#allocation15_spill]] %s2426_s8 }
   0x7   :  { %2443 = sst [smem:[#allocation16_spill]] %s2427_s9 }
   0x8   :  { %2444 = sst [smem:[#allocation17_spill]] %s2431_s13 }
   0x9   :  { %2445 = sst [smem:[#allocation18_spill]] %s2432_s14 }
   0xa LB: > { %2446 = sst [smem:[#allocation4_spill]] %s2041_s29  ;;  %s33_s18 = sadd.s32 1, %s2049_s15  ;;  %s2057_s17 = sphi %s2158_s17, %s24_s17   ;;  %s2053_s16 = sphi %s2156_s16, %s2477_s16   ;;  %s2049_s15 = sphi %s2154_s15, %s2476_s15   ;;  %s2045_s30 = sphi %s2152_s30, %s2475_s30   ;;  %s2041_s29 = sphi %s2150_s29, %s2474_s29  }
   0xb   : > { %2447 = sst [smem:[#allocation5_spill]] %s2049_s15  ;;  %s36_s19 = sadd.s32 1, %s2053_s16 }
   0xc   : > { %2448 = sst [smem:[#allocation6_spill]] %s2053_s16  ;;  %p34_p0 = scmp.ge.s32.totalorder %s33_s18, 2 }
   0xd   : > { %2449 = sst [smem:[#allocation7_spill]] %s2057_s17  ;;  %p1761_p1 = scmp.ge.s32.totalorder %s2057_s17, 1 }
   0xe   : > { %p537_p2 = scmp.lt.s32.totalorder %s2057_s17, 5  ;;  %s2479_s18 = smov (%p34_p0, %s33_s18), 0 }
   0xf   : > { %2450 = sst [smem:[#allocation8_spill]] %s2479_s18  ;;  %s2481_s19 = smov (!%p34_p0, %s36_s19), %s2053_s16 }
  0x10   : > { %p538_p3 = pnand %p1761_p1, %p537_p2  ;;  %p38_p4 = scmp.ge.s32.totalorder %s2481_s19, 2 }
  0x11   : > { %p632_p5 = scmp.lt.s32.totalorder (!%p538_p3), %s2045_s30, 1  ;;  %p639_p6 = scmp.lt.s32.totalorder (!%p538_p3), %s2041_s29, 1 }
  0x12   : > { %s2483_s19 = smov (%p38_p4, %s2481_s19), 0  ;;  %541 = sbr.rel (%p538_p3) target bundleno = 2625 (0xa41), region = 76 }
  0x13   : > { %2451 = sst [smem:[#allocation9_spill]] %s2483_s19  ;;  %s2453_s0 = sld [smem:[#allocation10_spill]] (!%p538_p3) }
  0x14   : > { %s2454_s2 = sld [smem:[#allocation12_spill]] (!%p538_p3)  ;;  %s2455_s4 = sld [smem:[#allocation13_spill]] (!%p538_p3) }
  0x15   : > { %s2457_s8 = sld [smem:[#allocation15_spill]] (!%p538_p3)  ;;  %s2459_s19 = sld [smem:[#allocation17_spill]] (!%p538_p3) }
  0x16   : > { %s2460_s24 = sld [smem:[#allocation18_spill]] (!%p538_p3)  ;;  %s2461_s25 = sld [smem:[#allocation4_spill]] (!%p538_p3) }
  0x19   : > { %s2485_s30 = smov (!%p632_p5, %s2045_s30), 1 }
  0x1a   : > { %s2186_s20 = scalar_select %p639_p6, %s2041_s29, 1 }
  0x1b   : > { %s1762_s21 = sshll.u32 %s2485_s30, 2 }
  0x1c   : > { %s635_s27 = scalar_lea.vmem %s2453_s0, %s1762_s21  ;;  %s1810_s28 = sshll.u32 %s2186_s20, 4 }
  0x1d   : > { %s643_s16 = scalar_lea.vmem %s2454_s2, %s1810_s28  ;;  %s2207_s22 = scalar_lea.vmem %s2455_s4, %s1810_s28 }
  0x1e   : > { %s2224_s17 = scalar_lea.vmem %s2457_s8, %s1810_s28  ;;  %s1813_s4 = sshll.u32 %s2186_s20, 5 }
  0x1f   : > { %s2238_s0 = scalar_lea.vmem %s2428_s10, %s1813_s4  ;;  %s679_s2 = scalar_lea.vmem %s2430_s12, %s2186_s20 }
  0x20   : > { %s682_s8 = scalar_lea.vmem %s2459_s19, %s2186_s20  ;;  %s1771_s13 = sshll.u32 %s2186_s20, 1 }
  0x21   : > { %s688_s14 = sadd.s32 %s1771_s13, %s2485_s30  ;;  %p1773_p7 = scmp.ne.s32.totalorder %s2461_s25, 0 }
  0x22   : > { %s1772_s29 = sshll.u32 %s688_s14, 2  ;;  %v696_v0 = vld [vmem:[%s635_s27] sm:$0xf] (!%p1773_p7)  ;;  %vm698_vm0 = vcmask (!%p1773_p7), 261120  }
  0x23   : > { %s2253_s23 = scalar_lea.vmem %s2460_s24, %s1772_s29  ;;  %695 = sbr.rel (%p1773_p7) target bundleno = 42 (0x2a), region = 80  ;;  %v697_v1 = vunpack.c.l.bf16 (!%p1773_p7), %v696_v0 }
  0x25   : > { %699 = vst.msk [vmem:[#allocation2] sm:$0xff] (!%p1773_p7), %vm698_vm0, %v697_v1 }
  0x2a PF: > { %v1987_v2 = vld [vmem:[%s643_s16] sm:$0xff]   ;;  %v2059_v3 = vmov 0.0   ;;  %v1988_v4 = vld [vmem:[%s643_s16 + $0x8] sm:$0xff]   ;;  %vm2060_vm1 = vmmov 0   ;;  %vm725_vm2 = vcmask 261120   ;;  %s2462_s9 = scalar_lea.vmem %s2421_s3, %s2186_s20  ;;  %s2061_s29 = smov 120  }
  0x2b   : > { %1847 = vmatprep.subr.bf16.mxu0 %v2059_v3  ;;  %1855 = vmatprep.subr.bf16.mxu1 %v2059_v3  ;;  %v1774_v7 = vld [vmem:[%s2462_s9] ss:$0 sm:$0xff]  ;;  %s2062_s16 = smov 96   ;;  %s2063_s27 = smov 80   ;;  %vm780_vm3 = vcmask 64512   ;;  %vm846_vm4 = vcmask 1043456  }
  0x2c   : > { %1848 = vmatpush3.bf16.msra.mxu0 %v1987_v2  ;;  %1851 = vmatprep.mubr.msk.bf16.mxu0 %vm2060_vm1, %v2059_v3  ;;  %v2260_v5 = vld [vmem:[#allocation2] sm:$0xff]  ;;  %s2064_s25 = smov 88   ;;  %s2065_s19 = smov 72   ;;  %vm891_vm5 = vcmask 60416   ;;  %vm1012_vm6 = vcmask 126016   ;;  %vm1133_vm7 = vcmask 191616  }
  0x2d   : > { %1849 = vmatprep.subr.bf16.mxu0 %v2059_v3  ;;  %1857 = vmatprep.mubr.msk.bf16.mxu1 %vm2060_vm1, %v2059_v3  ;;  %v701_v6 = vpack.c.bf16 %v2260_v5, %v2260_v5  ;;  %s2066_s21 = smov 112   ;;  %s2067_s26 = smov 104   ;;  %vm1254_vm8 = vcmask 257216   ;;  %vm1470_vm9 = vcmask 523264   ;;  %vm1546_vm10 = vcmask 257024  }
  0x2e   : > { %s2463_s28 = sld [smem:[#allocation11_spill]]  ;;  %s2069_s13 = smov 64  }
  0x2f   : > { %s2070_s14 = smov 40   ;;  %s2071_s24 = smov 48  }
  0x30   : > { %1850 = vmatpush3.bf16.msra.mxu0 %v1988_v4  ;;  %s2072_s4 = smov 8   ;;  %s2073_s7 = smov 16  }
  0x31   : > { %1861 = vmatprep.subr.bf16.mxu0 %v2059_v3  ;;  %s2074_s9 = smov 24   ;;  %s2467_s1 = sld [smem:[#allocation14_spill]] }
  0x33   : > { %1852 = vmatmul.mubr.msk.bf16.vlgmr.msra.gmra.mrb[0].mxu0 %vm725_vm2, %v701_v6 }
  0x34   : > { %1863 = vmatprep.mubr.msk.bf16.mxu0 %vm2060_vm1, %v2059_v3  ;;  %s2464_s15 = scalar_lea.vmem %s2463_s28, %s2485_s30  ;;  %s2068_s30 = smov 56  }
  0x35   : > { %v1778_v26 = vld [vmem:[%s2464_s15] ss:$0 sm:$0xff]  ;;  %s2469_s15 = sld [smem:[#allocation16_spill]] }
  0x37   : > { %s2468_s18 = scalar_lea.vmem %s2467_s1, %s2186_s20 }
 0x106   : > { %v763_v8 = vpop.f32.mrb[0].mxu0 }
 0x107   : > { %v764_v9 = vadd.f32 %v1774_v7, %v763_v8  ;;  %v1853_v10 = vpop.f32.mrb[1].mxu0 }
 0x108   : > { %v766_v11 = vpop.f32.mrb[2].mxu0 }
 0x109   : > { %v2276_v12 = vpack.c.bf16 %v764_v9, %v764_v9  ;;  %v1854_v13 = vpop.f32.mrb[3].mxu0 }
 0x10b   : > { %893 = vrot.lane.b32.xlu1 %v2276_v12, %s2061_s29  ;;  %778 = vrot.lane.b32.xlu0 %v2276_v12, %s2062_s16  ;;  %s2465_s16 = scalar_lea.vmem %s2423_s5, %s2186_s20 }
 0x10f   : > { %1016 = vrot.lane.b32.xlu1 %v2276_v12, %s2063_s27  ;;  %895 = vrot.lane.b32.xlu0 %v2276_v12, %s2064_s25 }
 0x113   : > { %1137 = vrot.lane.b32.xlu1 %v2276_v12, %s2065_s19  ;;  %1014 = vrot.lane.b32.xlu0 %v2276_v12, %s2066_s21  ;;  %s2466_s19 = scalar_lea.vmem %s2424_s6, %s2186_s20 }
 0x117   : > { %1135 = vrot.lane.b32.xlu0 %v2276_v12, %s2067_s26 }
 0x17d   : > { %v779_v14 = vpop.permute.xlu0 %778  ;;  %v894_v17 = vpop.permute.xlu1 %893 }
 0x17e   : > { %v785_v15 = vsel %vm780_vm3, %v779_v14, 0 }
 0x17f   : > { %1856 = vmatpush3.bf16.xpose.msra.mxu1 %v785_v15 }
 0x180   : > { %1867 = vmatprep.subr.bf16.mxu1 %v2059_v3 }
 0x181   : > { %v896_v16 = vpop.permute.xlu0 %895  ;;  %v1017_v19 = vpop.permute.xlu1 %1016 }
 0x182   : > { %v901_v18 = vsel %vm780_vm3, %v896_v16, 0  ;;  %v1022_v20 = vsel %vm780_vm3, %v1017_v19, 0 }
 0x185   : > { %v1138_v21 = vpop.permute.xlu1 %1137  ;;  %v1015_v22 = vpop.permute.xlu0 %1014 }
 0x186   : > { %1858 = vmatmul.mubr.msk.bf16.vlgmr.msra.gmra.mrb[0].mxu1 %vm780_vm3, %v2276_v12  ;;  %v1143_v23 = vsel %vm780_vm3, %v1138_v21, 0 }
 0x187   : > { %1868 = vmatpush3.bf16.xpose.msra.mxu1 %v901_v18  ;;  %1869 = vmatprep.mubr.msk.bf16.mxu1 %vm2060_vm1, %v2059_v3 }
 0x188   : > { %1879 = vmatprep.subr.bf16.mxu1 %v2059_v3 }
 0x189   : > { %v1136_v24 = vpop.permute.xlu0 %1135 }
 0x18e   : > { %1870 = vmatmul.mubr.msk.bf16.vlgmr.msra.gmra.mrb[4].mxu1 %vm780_vm3, %v894_v17 }
 0x18f   : > { %1880 = vmatpush3.bf16.xpose.msra.mxu1 %v1022_v20  ;;  %1881 = vmatprep.mubr.msk.bf16.mxu1 %vm2060_vm1, %v2059_v3 }
 0x190   : > { %1891 = vmatprep.subr.bf16.mxu1 %v2059_v3 }
 0x196   : > { %1882 = vmatmul.mubr.msk.bf16.vlgmr.msra.gmra.mrb[8].mxu1 %vm780_vm3, %v1015_v22 }
 0x197   : > { %1892 = vmatpush3.bf16.xpose.msra.mxu1 %v1143_v23  ;;  %1893 = vmatprep.mubr.msk.bf16.mxu1 %vm2060_vm1, %v2059_v3 }
 0x198   : > { %1903 = vmatprep.subr.bf16.mxu1 %v2059_v3 }
 0x19e   : > { %1894 = vmatmul.mubr.msk.bf16.vlgmr.msra.gmra.mrb[12].mxu1 %vm780_vm3, %v1136_v24 }
 0x19f   : > { %1907 = vmatprep.mubr.msk.bf16.mxu1 %vm2060_vm1, %v2059_v3 }
 0x259   : > { %v821_v25 = vpop.f32.mrb[0].mxu1 }
 0x25a   : > { %v827_v27 = vmul.f32 0.35355338, %v821_v25  ;;  %v1859_v28 = vpop.f32.mrb[1].mxu1 }
 0x25b   : > { %v824_v29 = vpop.f32.mrb[2].mxu1 }
 0x25c   : > { %v1860_v30 = vpop.f32.mrb[3].mxu1  ;;  %v828_v31 = vadd.f32 %v1778_v26, %v827_v27 }
 0x25e   : > { %v829_v32 = vsel %vm780_vm3, %v828_v31, -inf }
 0x25f   : > { %830 = vmax.xlane.f32.xlu1 %v829_v32 }
 0x261   : > { %v937_v33 = vpop.f32.mrb[4].mxu1 }
 0x262   : > { %v943_v34 = vmul.f32 0.35355338, %v937_v33  ;;  %v1871_v35 = vpop.f32.mrb[5].mxu1 }
 0x263   : > { %v940_v36 = vpop.f32.mrb[6].mxu1 }
 0x264   : > { %v1872_v37 = vpop.f32.mrb[7].mxu1  ;;  %v944_v38 = vadd.f32 %v1778_v26, %v943_v34 }
 0x266   : > { %v945_v39 = vsel %vm780_vm3, %v944_v38, -inf }
 0x267   : > { %946 = vmax.xlane.f32.xlu0 %v945_v39 }
 0x269   : > { %v1058_v40 = vpop.f32.mrb[8].mxu1 }
 0x26a   : > { %v1064_v41 = vmul.f32 0.35355338, %v1058_v40  ;;  %v1883_v42 = vpop.f32.mrb[9].mxu1 }
 0x26b   : > { %v1061_v43 = vpop.f32.mrb[10].mxu1 }
 0x26c   : > { %v1884_v44 = vpop.f32.mrb[11].mxu1  ;;  %v1065_v45 = vadd.f32 %v1778_v26, %v1064_v41 }
 0x26e   : > { %v1066_v46 = vsel %vm780_vm3, %v1065_v45, -inf }
 0x26f   : > { %1067 = vmax.xlane.f32.xlu0 %v1066_v46  ;;  %v1989_v46 = vld [vmem:[%s2207_s22] sm:$0xff]  }
 0x270   : > { %1904 = vmatpush3.bf16.msra.mxu1 %v1989_v46 }
 0x271   : > { %v1179_v47 = vpop.f32.mrb[12].mxu1  ;;  %1905 = vmatprep.subr.bf16.mxu1 %v2059_v3 }
 0x272   : > { %v1185_v48 = vmul.f32 0.35355338, %v1179_v47  ;;  %v1895_v49 = vpop.f32.mrb[13].mxu1  ;;  %v1990_v47 = vld [vmem:[%s2207_s22 + $0x8] sm:$0xff]  }
 0x273   : > { %v1182_v50 = vpop.f32.mrb[14].mxu1 }
 0x274   : > { %v1896_v51 = vpop.f32.mrb[15].mxu1  ;;  %v1186_v52 = vadd.f32 %v1778_v26, %v1185_v48  ;;  %1906 = vmatpush3.bf16.msra.mxu1 %v1990_v47 }
 0x275   : > { %1919 = vmatprep.subr.bf16.mxu1 %v2059_v3 }
 0x276   : > { %v1187_v53 = vsel %vm780_vm3, %v1186_v52, -inf }
 0x277   : > { %1188 = vmax.xlane.f32.xlu1 %v1187_v53 }
 0x2ec   : > { %v831_v54 = vpop.xlane.xlu1 %830 }
 0x2ed   : > { %v832_v55 = vsub.f32 %v828_v31, %v831_v54 }
 0x2ef   : > { %v833_v56 = vmul.f32 1.442695, %v832_v55 }
 0x2f1   : > { %1997 = vpow2.f32 %v833_v56 }
 0x2f4   : > { %v947_v57 = vpop.xlane.xlu0 %946 }
 0x2f5   : > { %v948_v58 = vsub.f32 %v944_v38, %v947_v57 }
 0x2f7   : > { %v949_v59 = vmul.f32 1.442695, %v948_v58 }
 0x2f9   : > { %1999 = vpow2.f32 %v949_v59 }
 0x2fb   : > { %v1998_v60 = vpop.eup %1997 }
 0x2fc   : > { %v1068_v61 = vpop.xlane.xlu0 %1067  ;;  %v835_v62 = vsel %vm780_vm3, %v1998_v60, 0.0 }
 0x2fd   : > { %v1069_v63 = vsub.f32 %v1065_v45, %v1068_v61  ;;  %836 = vadd.xlane.f32.xlu0 %v835_v62  ;;  %v1790_v62 = vld [vmem:[%s2465_s16] ss:$0 sm:$0xff] }
 0x2ff   : > { %v1070_v0 = vmul.f32 1.442695, %v1069_v63 }
 0x301   : > { %2001 = vpow2.f32 %v1070_v0 }
 0x303   : > { %v2000_v1 = vpop.eup %1999 }
 0x304   : > { %v951_v2 = vsel %vm780_vm3, %v2000_v1, 0.0  ;;  %v1189_v7 = vpop.xlane.xlu1 %1188 }
 0x305   : > { %952 = vadd.xlane.f32.xlu1 %v951_v2  ;;  %v1190_v8 = vsub.f32 %v1186_v52, %v1189_v7 }
 0x307   : > { %v1191_v9 = vmul.f32 1.442695, %v1190_v8 }
 0x309   : > { %2003 = vpow2.f32 %v1191_v9 }
 0x30b   : > { %v2002_v4 = vpop.eup %2001 }
 0x30c   : > { %v1072_v6 = vsel %vm780_vm3, %v2002_v4, 0.0 }
 0x30d   : > { %1073 = vadd.xlane.f32.xlu0 %v1072_v6 }
 0x313   : > { %v2004_v10 = vpop.eup %2003 }
 0x314   : > { %v1193_v11 = vsel %vm780_vm3, %v2004_v10, 0.0 }
 0x316   : > { %957 = vrot.lane.b32.xlu1 %v2276_v12, %s2068_s30  ;;  %s2470_s30 = scalar_lea.vmem %s2469_s15, %s2186_s20 }
 0x323   : > { %841 = vrot.lane.b32.xlu0 %v2276_v12, %s2069_s13 }
 0x327   : > { %1199 = vrot.lane.b32.xlu0 %v2276_v12, %s2070_s14  ;;  %s2471_s14 = scalar_lea.vmem %s2429_s11, %s2186_s20 }
 0x33a   : > { %1194 = vadd.xlane.f32.xlu1 %v1193_v11 }
 0x34b   : > { %1078 = vrot.lane.b32.xlu1 %v2276_v12, %s2071_s24 }
 0x38a   : > { %v837_v13 = vpop.xlane.xlu0 %836 }
 0x38b   : > { %2005 = vrcp.f32 %v837_v13 }
 0x392   : > { %v953_v14 = vpop.xlane.xlu1 %952 }
 0x393   : > { %2007 = vrcp.f32 %v953_v14  ;;  %v1991_v14 = vld [vmem:[%s2224_s17] sm:$0xff]  }
 0x395   : > { %v2006_v15 = vpop.eup %2005 }
 0x396   : > { %v839_v17 = vmul.f32 %v2006_v15, %v1998_v60  ;;  %v958_v20 = vpop.permute.xlu1 %957  ;;  %v1992_v15 = vld [vmem:[%s2224_s17 + $0x8] sm:$0xff]  }
 0x397   : > { %v963_v23 = vsel %vm846_vm4, %v958_v20, 0 }
 0x398   : > { %v840_v21 = vpack.c.bf16 %v839_v17, %v839_v17 }
 0x39a   : > { %v1074_v16 = vpop.xlane.xlu0 %1073 }
 0x39b   : > { %2009 = vrcp.f32 %v1074_v16 }
 0x39d   : > { %v2008_v22 = vpop.eup %2007 }
 0x39e   : > { %v842_v18 = vpop.permute.xlu0 %841  ;;  %v955_v12 = vmul.f32 %v2008_v22, %v2000_v1 }
 0x39f   : > { %v848_v19 = vsel %vm846_vm4, %v842_v18, 0 }
 0x3a0   : > { %1862 = vmatpush3.bf16.msra.mxu0 %v848_v19  ;;  %v956_v24 = vpack.c.bf16 %v955_v12, %v955_v12  ;;  %v1794_v19 = vld [vmem:[%s2466_s19] ss:$0 sm:$0xff] }
 0x3a1   : > { %1873 = vmatprep.subr.bf16.mxu0 %v2059_v3 }
 0x3a2   : > { %v1200_v30 = vpop.permute.xlu0 %1199 }
 0x3a3   : > { %1864 = vmatmul.mubr.msk.bf16.vlgmr.msra.gmra.mrb[4].mxu0 %vm780_vm3, %v840_v21  ;;  %v1205_v32 = vsel %vm846_vm4, %v1200_v30, 0  ;;  %v1795_v21 = vld [vmem:[%s2468_s18] ss:$0 sm:$0xff] }
 0x3a4   : > { %1874 = vmatpush3.bf16.msra.mxu0 %v963_v23  ;;  %1875 = vmatprep.mubr.msk.bf16.mxu0 %vm2060_vm1, %v2059_v3 }
 0x3a5   : > { %1885 = vmatprep.subr.bf16.mxu0 %v2059_v3  ;;  %v2010_v25 = vpop.eup %2009 }
 0x3a6   : > { %v1076_v27 = vmul.f32 %v2010_v25, %v2002_v4  ;;  %v1994_v25 = vld [vmem:[%s2238_s0 + $0x8] sm:$0xff]  }
 0x3a8   : > { %v1077_v31 = vpack.c.bf16 %v1076_v27, %v1076_v27  ;;  %v1996_v27 = vld [vmem:[%s2238_s0 + $0x18] sm:$0xff]  }
 0x3ab   : > { %1876 = vmatmul.mubr.msk.bf16.vlgmr.msra.gmra.mrb[8].mxu0 %vm780_vm3, %v956_v24  ;;  %v1993_v24 = vld [vmem:[%s2238_s0] sm:$0xff]  }
 0x3ac   : > { %1887 = vmatprep.mubr.msk.bf16.mxu0 %vm2060_vm1, %v2059_v3 }
 0x3c7   : > { %v1195_v26 = vpop.xlane.xlu1 %1194 }
 0x3c8   : > { %2011 = vrcp.f32 %v1195_v26  ;;  %v1995_v26 = vld [vmem:[%s2238_s0 + $0x10] sm:$0xff]  }
 0x3cb   : > { %v1079_v28 = vpop.permute.xlu1 %1078 }
 0x3cc   : > { %v1084_v29 = vsel %vm846_vm4, %v1079_v28, 0  ;;  %v1796_v28 = vld [vmem:[%s2470_s30] ss:$0 sm:$0xff] }
 0x3cd   : > { %1886 = vmatpush3.bf16.msra.mxu0 %v1084_v29 }
 0x3ce   : > { %1897 = vmatprep.subr.bf16.mxu0 %v2059_v3 }
 0x3d0   : > { %1888 = vmatmul.mubr.msk.bf16.vlgmr.msra.gmra.mrb[12].mxu0 %vm780_vm3, %v1077_v31 }
 0x3d1   : > { %1898 = vmatpush3.bf16.msra.mxu0 %v1205_v32  ;;  %1899 = vmatprep.mubr.msk.bf16.mxu0 %vm2060_vm1, %v2059_v3 }
 0x3d2   : > { %v2012_v33 = vpop.eup %2011  ;;  %1911 = vmatprep.subr.bf16.mxu0 %v2059_v3 }
 0x3d3   : > { %v1197_v34 = vmul.f32 %v2012_v33, %v2004_v10 }
 0x3d5   : > { %v1198_v35 = vpack.c.bf16 %v1197_v34, %v1197_v34 }
 0x3d8   : > { %1900 = vmatmul.mubr.msk.bf16.vlgmr.msra.gmra.mrb[16].mxu0 %vm780_vm3, %v1198_v35 }
 0x3d9   : > { %1915 = vmatprep.mubr.msk.bf16.mxu0 %vm2060_vm1, %v2059_v3  ;;  %1912 = vmatpush3.bf16.msra.mxu0 %v1991_v14 }
 0x3da   : > { %1913 = vmatprep.subr.bf16.mxu0 %v2059_v3 }
 0x3dd   : > { %1914 = vmatpush3.bf16.msra.mxu0 %v1992_v15 }
 0x476   : > { %v884_v36 = vpop.f32.mrb[4].mxu0 }
 0x477   : > { %v890_v37 = vpack.c.bf16 %v884_v36, %v884_v36  ;;  %v1865_v38 = vpop.f32.mrb[5].mxu0 }
 0x478   : > { %v887_v39 = vpop.f32.mrb[6].mxu0 }
 0x479   : > { %892 = vst.msk [vmem:[#allocation3] sm:$0xf] %vm891_vm5, %v890_v37  ;;  %v1866_v40 = vpop.f32.mrb[7].mxu0 }
 0x47e   : > { %v999_v41 = vpop.f32.mrb[8].mxu0 }
 0x47f   : > { %v1814_v42 = vpack.c.bf16 %v999_v41, %v999_v41  ;;  %v1877_v43 = vpop.f32.mrb[9].mxu0 }
 0x480   : > { %v1002_v44 = vpop.f32.mrb[10].mxu0  ;;  %v1800_v43 = vld [vmem:[%s2471_s14] ss:$0 sm:$0xff] }
 0x481   : > { %1009 = vrot.lane.b32.xlu1 %v1814_v42, %s2072_s4  ;;  %v1878_v45 = vpop.f32.mrb[11].mxu0 }
 0x4a3   : > { %v1120_v48 = vpop.f32.mrb[12].mxu0 }
 0x4a4   : > { %v1815_v49 = vpack.c.bf16 %v1120_v48, %v1120_v48  ;;  %v1889_v50 = vpop.f32.mrb[13].mxu0 }
 0x4a5   : > { %v1123_v51 = vpop.f32.mrb[14].mxu0 }
 0x4a6   : > { %1130 = vrot.lane.b32.xlu0 %v1815_v49, %s2073_s7  ;;  %v1890_v52 = vpop.f32.mrb[15].mxu0 }
 0x4ab   : > { %v1241_v53 = vpop.f32.mrb[16].mxu0 }
 0x4ac   : > { %v1816_v54 = vpack.c.bf16 %v1241_v53, %v1241_v53  ;;  %v1901_v55 = vpop.f32.mrb[17].mxu0 }
 0x4ad   : > { %v1244_v56 = vpop.f32.mrb[18].mxu0 }
 0x4ae   : > { %1251 = vrot.lane.b32.xlu1 %v1816_v54, %s2074_s9  ;;  %v1902_v57 = vpop.f32.mrb[19].mxu0 }
 0x4f3   : > { %v1010_v58 = vpop.permute.xlu1 %1009 }
 0x4f4   : > { %1013 = vst.msk [vmem:[#allocation3] sm:$0xf] %vm1012_vm6, %v1010_v58 }
 0x518   : > { %v1131_v59 = vpop.permute.xlu0 %1130 }
 0x519   : > { %1134 = vst.msk [vmem:[#allocation3] sm:$0xf] %vm1133_vm7, %v1131_v59 }
 0x520   : > { %v1252_v60 = vpop.permute.xlu1 %1251 }
 0x521   : > { %1255 = vst.msk [vmem:[#allocation3] sm:$0xf] %vm1254_vm8, %v1252_v60  ;;  %v1806_v60 = vld [vmem:[%s679_s2] ss:$0 sm:$0xff] }
 0x528   : > { %v1256_v61 = vld [vmem:[#allocation3] sm:$0xf] }
 0x529   : > { %1908 = vmatmul.mubr.msk.bf16.vlgmr.msra.gmra.mrb[16].mxu1 %vm725_vm2, %v1256_v61 }
 0x52a   : > { %1927 = vmatprep.mubr.msk.bf16.mxu1 %vm2060_vm1, %v2059_v3  ;;  %1920 = vmatpush3.bf16.msra.mxu1 %v1993_v24 }
 0x52b   : > { %1921 = vmatprep.subr.bf16.mxu1 %v2059_v3 }
 0x52e   : > { %1922 = vmatpush3.bf16.msra.mxu1 %v1994_v25 }
 0x52f   : > { %1923 = vmatprep.subr.bf16.mxu1 %v2059_v3 }
 0x532   : > { %1924 = vmatpush3.bf16.msra.mxu1 %v1995_v26 }
 0x533   : > { %1925 = vmatprep.subr.bf16.mxu1 %v2059_v3 }
 0x536   : > { %1926 = vmatpush3.bf16.msra.mxu1 %v1996_v27 }
 0x5fc   : > { %v1317_v63 = vpop.f32.mrb[16].mxu1 }
 0x5fd   : > { %v1318_v0 = vadd.f32 %v1790_v62, %v1317_v63  ;;  %v1909_v1 = vpop.f32.mrb[17].mxu1  ;;  %v1807_v62 = vld [vmem:[%s682_s8] ss:$0 sm:$0xff] }
 0x5fe   : > { %v1320_v2 = vpop.f32.mrb[18].mxu1 }
 0x5ff   : > { %v1910_v4 = vpop.f32.mrb[19].mxu1  ;;  %v1323_v6 = vadd.f32 %v1318_v0, %v2260_v5 }
 0x601   : > { %v1326_v7 = vsel %vm725_vm2, %v1323_v6, 0.0 }
 0x602   : > { %1327 = vadd.xlane.f32.xlu0 %v1326_v7 }
 0x68f   : > { %v1328_v8 = vpop.xlane.xlu0 %1327 }
 0x690   : > { %v1330_v9 = vmul.f32 0.03125, %v1328_v8 }
 0x692   : > { %v1331_v10 = vsub.f32 %v1323_v6, %v1330_v9 }
 0x694   : > { %v1332_v11 = vmul.f32 %v1331_v10, %v1331_v10 }
 0x696   : > { %v1333_v13 = vsel %vm725_vm2, %v1332_v11, 0.0 }
 0x697   : > { %1334 = vadd.xlane.f32.xlu1 %v1333_v13 }
 0x724   : > { %v1335_v5 = vpop.xlane.xlu1 %1334 }
 0x725   : > { %v1336_v16 = vmul.f32 0.03125, %v1335_v5 }
 0x727   : > { %v1337_v17 = vadd.f32 1e-05, %v1336_v16 }
 0x729   : > { %2013 = vrsqrt.f32 %v1337_v17 }
 0x733   : > { %v2014_v18 = vpop.eup %2013 }
 0x734   : > { %v1339_v20 = vmul.f32 %v2014_v18, %v1331_v10 }
 0x736   : > { %v1346_v22 = vmul.f32 %v1794_v19, %v1339_v20 }
 0x738   : > { %v1353_v23 = vadd.f32 %v1795_v21, %v1346_v22 }
 0x73a   : > { %v1354_v12 = vpack.c.bf16 %v1353_v23, %v1353_v23 }
 0x73c   : > { %1916 = vmatmul.mubr.msk.bf16.vlgmr.msra.gmra.mrb[20].mxu0 %vm725_vm2, %v1354_v12 }
 0x80f   : > { %v1415_v29 = vpop.f32.mrb[20].mxu0 }
 0x810   : > { %v1416_v30 = vadd.f32 %v1796_v28, %v1415_v29  ;;  %v1917_v31 = vpop.f32.mrb[21].mxu0 }
 0x811   : > { %v1418_v32 = vpop.f32.mrb[22].mxu0 }
 0x812   : > { %v1422_v33 = vmul.f32 0.044715, %v1416_v30  ;;  %v1918_v34 = vpop.f32.mrb[23].mxu0  ;;  %v1421_v3 = vmul.f32 0.5, %v1416_v30 }
 0x814   : > { %v1423_v35 = vmul.f32 %v1422_v33, %v1416_v30 }
 0x816   : > { %v1424_v36 = vmul.f32 %v1423_v35, %v1416_v30 }
 0x818   : > { %v1425_v37 = vadd.f32 %v1424_v36, %v1416_v30 }
 0x81a   : > { %v1426_v38 = vmul.f32 0.7978846, %v1425_v37 }
 0x81c   : > { %2015 = vtanh.f32 %v1426_v38 }
 0x826   : > { %v2016_v39 = vpop.eup %2015 }
 0x827   : > { %v1428_v40 = vadd.f32 1.0, %v2016_v39 }
 0x829   : > { %v1429_v41 = vmul.f32 %v1428_v40, %v1421_v3 }
 0x82b   : > { %v1430_v42 = vpack.c.bf16 %v1429_v41, %v1429_v41 }
 0x82d   : > { %1928 = vmatmul.mubr.msk.bf16.vlgmr.msra.gmra.mrb[20].mxu1 %vm1470_vm9, %v1430_v42 }
 0x900   : > { %v1508_v44 = vpop.f32.mrb[20].mxu1 }
 0x901   : > { %v1509_v45 = vadd.f32 %v1800_v43, %v1508_v44  ;;  %v1929_v46 = vpop.f32.mrb[21].mxu1 }
 0x902   : > { %v1511_v47 = vpop.f32.mrb[22].mxu1 }
 0x903   : > { %v1930_v48 = vpop.f32.mrb[23].mxu1  ;;  %v1514_v49 = vadd.f32 %v1509_v45, %v1353_v23 }
 0x905   : > { %v1517_v50 = vsel %vm725_vm2, %v1514_v49, 0.0 }
 0x906   : > { %1518 = vadd.xlane.f32.xlu0 %v1517_v50 }
 0x993   : > { %v1519_v51 = vpop.xlane.xlu0 %1518 }
 0x994   : > { %v1520_v52 = vmul.f32 0.03125, %v1519_v51 }
 0x996   : > { %v1521_v53 = vsub.f32 %v1514_v49, %v1520_v52 }
 0x998   : > { %v1522_v54 = vmul.f32 %v1521_v53, %v1521_v53 }
 0x99a   : > { %v1523_v55 = vsel %vm725_vm2, %v1522_v54, 0.0 }
 0x99b   : > { %1524 = vadd.xlane.f32.xlu0 %v1523_v55 }
 0xa28   : > { %v1525_v56 = vpop.xlane.xlu0 %1524 }
 0xa29   : > { %v1526_v57 = vmul.f32 0.03125, %v1525_v56 }
 0xa2b   : > { %v1527_v58 = vadd.f32 1e-05, %v1526_v57 }
 0xa2d   : > { %2017 = vrsqrt.f32 %v1527_v58 }
 0xa37   : > { %v2018_v59 = vpop.eup %2017 }
 0xa38   : > { %v1529_v61 = vmul.f32 %v2018_v59, %v1521_v53 }
 0xa3a   : > { %v1536_v63 = vmul.f32 %v1806_v60, %v1529_v61 }
 0xa3c   : > { %v1543_v0 = vadd.f32 %v1807_v62, %v1536_v63 }
 0xa3e   : > { %1544 = vst.msk [vmem:[#allocation2] sm:$0xff] %vm725_vm2, %v1543_v0  ;;  %v1545_v1 = vpack.c.bf16 %v1543_v0, %v1543_v0 }
 0xa40   : > { %1547 = vst.msk [vmem:[%s2253_s23] sm:$0xf] %vm1546_vm10, %v1545_v1 }
 0xa41 PF: > { %s2473_s29 = sld [smem:[#allocation7_spill]]  ;;  %s2475_s30 = sld [smem:[#allocation6_spill]] }
 0xa42   : > { %s2476_s15 = sld [smem:[#allocation8_spill]]  ;;  %s2477_s16 = sld [smem:[#allocation9_spill]] }
 0xa47   : > { %s24_s17 = sadd.s32 1, %s2473_s29   ;;  %s2474_s29 = sld [smem:[#allocation5_spill]] }
 0xa48   : > { %p21_p8 = scmp.ge.s32.totalorder %s24_s17, 6  }
 0xa4a   :  { %23 = sbr.rel (!%p21_p8) target bundleno = 10 (0xa), region = 149 }

</bundles_post_ra>
